<compile_context>
chip_gen: v6e
topology: v6e:2x2x1
jax: 0.10.0
libtpu: 0.0.40
codegen_flags: <defaults>
</compile_context>

<pallas_src>
import functools

import jax
import jax.numpy as jnp
import numpy as np
from jax.experimental import pallas as pl
from jax.experimental.pallas import tpu as pltpu

EPS = 1e-8  # nn.GroupNorm(..., eps=1e-08) in the module spec


# ----------------------------- in-kernel helpers -----------------------------

def _group_norm_full(y, gamma, beta):
    # GroupNorm(1, C): normalize over ALL (C, L) elements of one batch item,
    # then per-channel affine.  Single-pass stats: sum and sum-of-squares.
    n = y.shape[0] * y.shape[1]
    inv_n = 1.0 / float(n)
    s = jnp.sum(y)
    ss = jnp.sum(y * y)
    mu = s * inv_n
    var = ss * inv_n - mu * mu
    return (y - mu) * jax.lax.rsqrt(var + EPS) * gamma + beta


def _prelu(y, a):
    # nn.PReLU() single parameter, pre-broadcast to (C, 1).
    return jnp.where(y > 0, y, a * y)


def _depthconv_branch(x, w1, b1, a1, g1, be1, wd, bd, a2, g2, be2, wr, br,
                      *, kernel_size, dilation):
    # x: (C, L) f32.  1x1 conv -> PReLU -> GN -> dilated depthwise 'same' conv
    # -> PReLU -> GN -> 1x1 res conv.  (skip_out branch unused by the caller.)
    y = jnp.dot(w1, x, preferred_element_type=jnp.float32) + b1            # (2C, L)
    y = _group_norm_full(_prelu(y, a1), g1, be1)

    C2, L = y.shape
    total = dilation * (kernel_size - 1)
    left = total // 2
    # 'same' padding: build ONE padded copy, then take kernel_size static slices.
    # (Avoids materializing a zero tile + lane-concatenate per tap; a pltpu.roll
    #  formulation was considered but padded static slices are guaranteed to lower
    #  at this non-native lane width L=32.)
    parts = []
    if left > 0:
        parts.append(jnp.zeros((C2, left), y.dtype))
    parts.append(y)
    if total - left > 0:
        parts.append(jnp.zeros((C2, total - left), y.dtype))
    yp = jnp.concatenate(parts, axis=1) if len(parts) > 1 else y
    acc = jnp.zeros_like(y)
    for j in range(kernel_size):                                           # static taps
        acc = acc + wd[:, j:j + 1] * yp[:, j * dilation:j * dilation + L]
    y = _group_norm_full(_prelu(acc + bd, a2), g2, be2)

    return jnp.dot(wr, y, preferred_element_type=jnp.float32) + br        # (C, L)


# ------------------------------ fused kernel ----------------------------------

def fused_cross_attn_kernel(q_ref, k_ref, v_ref,
                            w1_ref, b1_ref, a1_ref, g1_ref, be1_ref,
                            wd_ref, bd_ref, a2_ref, g2_ref, be2_ref,
                            wr_ref, br_ref,
                            lng_ref, lnb_ref,
                            out_ref, o_scr,
                            *, n_head, d_k, d_v, kernel_size, dilation):
    xs = (q_ref[...].astype(jnp.float32),
          k_ref[...].astype(jnp.float32),
          v_ref[...].astype(jnp.float32))

    # Three DepthConv1d branches (q / k / v), weights indexed from the stacked refs.
    proj = []
    for i in range(3):
        proj.append(_depthconv_branch(
            xs[i],
            w1_ref[i], b1_ref[i], a1_ref[i], g1_ref[i], be1_ref[i],
            wd_ref[i], bd_ref[i], a2_ref[i], g2_ref[i], be2_ref[i],
            wr_ref[i], br_ref[i],
            kernel_size=kernel_size, dilation=dilation))
    qp, kp, vp = proj                                                     # each (C, L)

    # Multi-head scaled-dot-product attention over the channel axis.
    inv_temp = 1.0 / (float(d_k) ** 0.5)
    qs = qp * inv_temp                 # scale hoisted out of the head loop
    kT = kp.T                          # one (C,L)->(L,C) transpose, shared by all heads

    for h in range(n_head):            # small, static
        qh = qs[:, h * d_k:(h + 1) * d_k]
        khT = kT[h * d_k:(h + 1) * d_k, :]
        vh = vp[:, h * d_v:(h + 1) * d_v]
        s = jnp.dot(qh, khT, preferred_element_type=jnp.float32)          # (C, C)
        s = s - jnp.max(s, axis=-1, keepdims=True)
        p = jnp.exp(s)
        p = p * pl.reciprocal(jnp.sum(p, axis=-1, keepdims=True), approx=True)
        # write this head's output straight into its slice (no concatenate)
        o_scr[:, h * d_v:(h + 1) * d_v] = jnp.dot(
            p, vh, preferred_element_type=jnp.float32)

    # TODO(synk): nn.Dropout (attn_dropout=0.1 and dropout=0.1) are identity (eval mode).
    y = o_scr[...] + xs[2]                                                # out += residual (original v)
    out_ref[...] = _group_norm_full(y, lng_ref[...], lnb_ref[...]).astype(out_ref.dtype)


# --------------------------- ConvCrossAttention glue ---------------------------

def conv_cross_attention_forward(q, k, v, params, *, n_head, d_k, d_v,
                                 kernel_size, dilation):
    B, C, L = q.shape
    assert L == n_head * d_k == n_head * d_v, "forward requires L == n_head*d_k == n_head*d_v"

    # Stack q/k/v branch parameters along a leading axis: 12 arrays instead of 36.
    stacked = [jnp.stack(ws)
               for ws in zip(params["w_qs"], params["w_ks"], params["w_vs"])]

    def full(shape):
        return pl.BlockSpec(shape, lambda b, _n=len(shape): (0,) * _n)

    blk = pl.BlockSpec((None, C, L), lambda b: (b, 0, 0))
    kern = functools.partial(fused_cross_attn_kernel, n_head=n_head, d_k=d_k,
                             d_v=d_v, kernel_size=kernel_size, dilation=dilation)
    return pl.pallas_call(
        kern,
        out_shape=jax.ShapeDtypeStruct((B, C, L), jnp.float32),
        grid=(B,),
        in_specs=[blk, blk, blk]
                 + [full(s.shape) for s in stacked]
                 + [full((C, 1)), full((C, 1))],
        out_specs=pl.BlockSpec((None, C, L), lambda b: (b, 0, 0)),
        scratch_shapes=[pltpu.VMEM((C, L), jnp.float32)],
        compiler_params=pltpu.CompilerParams(
            dimension_semantics=("parallel",)),   # batch axis -> 2 TCs on v7x
    )(q, k, v, *stacked, params["ln_gamma"], params["ln_beta"])


# ---------------------------- deterministic params -----------------------------

def init_depthconv_params(key, in_ch, kernel_size):
    hid = 2 * in_ch
    ks = jax.random.split(key, 10)
    w1 = 0.3 * jax.random.normal(ks[0], (hid, in_ch), jnp.float32)
    b1 = 0.1 * jax.random.normal(ks[1], (hid, 1), jnp.float32)
    a1 = jnp.full((hid, 1), 0.25, jnp.float32)          # nn.PReLU() default init
    g1 = 1.0 + 0.1 * jax.random.normal(ks[2], (hid, 1), jnp.float32)
    be1 = 0.1 * jax.random.normal(ks[3], (hid, 1), jnp.float32)
    wd = 0.3 * jax.random.normal(ks[4], (hid, kernel_size), jnp.float32)
    bd = 0.1 * jax.random.normal(ks[5], (hid, 1), jnp.float32)
    a2 = jnp.full((hid, 1), 0.25, jnp.float32)
    g2 = 1.0 + 0.1 * jax.random.normal(ks[6], (hid, 1), jnp.float32)
    be2 = 0.1 * jax.random.normal(ks[7], (hid, 1), jnp.float32)
    wr = 0.3 * jax.random.normal(ks[8], (in_ch, hid), jnp.float32)
    br = 0.1 * jax.random.normal(ks[9], (in_ch, 1), jnp.float32)
    return (w1, b1, a1, g1, be1, wd, bd, a2, g2, be2, wr, br)


# ------------------------------ pure-JAX reference ------------------------------

def _ref_gn(y, g, be):
    mu = jnp.mean(y, axis=(1, 2), keepdims=True)
    var = jnp.mean((y - mu) ** 2, axis=(1, 2), keepdims=True)
    return (y - mu) / jnp.sqrt(var + EPS) * g[None] + be[None]


def ref_depthconv(x, p, kernel_size, dilation):
    (w1, b1, a1, g1, be1, wd, bd, a2, g2, be2, wr, br) = p
    prelu = lambda y, a: jnp.where(y > 0, y, a[None] * y)
    y = jnp.einsum("oc,bcl->bol", w1, x) + b1[None]
    y = _ref_gn(prelu(y, a1), g1, be1)
    total = dilation * (kernel_size - 1)
    left = total // 2
    yp = jnp.pad(y, ((0, 0), (0, 0), (left, total - left)))
    L = x.shape[-1]
    acc = jnp.zeros_like(y)
    for j in range(kernel_size):
        acc = acc + wd[None, :, j:j + 1] * yp[:, :, j * dilation:j * dilation + L]
    y = _ref_gn(prelu(acc + bd[None], a2), g2, be2)
    return jnp.einsum("oc,bcl->bol", wr, y) + br[None]


def ref_forward(q, k, v, params, *, n_head, d_k, d_v, kernel_size, dilation):
    B, C, L = q.shape
    residual = v
    qp = ref_depthconv(q, params["w_qs"], kernel_size, dilation)
    kp = ref_depthconv(k, params["w_ks"], kernel_size, dilation)
    vp = ref_depthconv(v, params["w_vs"], kernel_size, dilation)
    qh = qp.reshape(B, C, n_head, d_k).transpose(0, 2, 1, 3)
    kh = kp.reshape(B, C, n_head, d_k).transpose(0, 2, 1, 3)
    vh = vp.reshape(B, C, n_head, d_v).transpose(0, 2, 1, 3)
    attn = jnp.einsum("bhqd,bhkd->bhqk", qh / (d_k ** 0.5), kh)
    attn = jax.nn.softmax(attn, axis=-1)
    o = jnp.einsum("bhqk,bhkd->bhqd", attn, vh)
    o = o.transpose(0, 2, 1, 3).reshape(B, C, n_head * d_v)
    y = o + residual
    mu = jnp.mean(y, axis=(1, 2), keepdims=True)
    var = jnp.mean((y - mu) ** 2, axis=(1, 2), keepdims=True)
    yn = (y - mu) / jnp.sqrt(var + EPS)
    return yn * params["ln_gamma"][None] + params["ln_beta"][None]


# ------------------------------------ main ------------------------------------

if __name__ == "__main__":
    # module hyper-params (small, consistent with the forward):
    B = 2
    in_ch = 8                 # == len_q == len_k == len_v (token axis)
    n_head = 2
    d_k = d_v = 16
    L = n_head * d_k          # feature axis; forward requires L == n_head*d_k == n_head*d_v
    kernel_size = 3
    dilation = 2

    key = jax.random.PRNGKey(0)
    kq, kk, kv, kpq, kpk, kpv, kg, kb = jax.random.split(key, 8)

    q = jax.random.normal(kq, (B, in_ch, L), jnp.float32)
    k = jax.random.normal(kk, (B, in_ch, L), jnp.float32)
    v = jax.random.normal(kv, (B, in_ch, L), jnp.float32)

    params = {
        "w_qs": init_depthconv_params(kpq, in_ch, kernel_size),
        "w_ks": init_depthconv_params(kpk, in_ch, kernel_size),
        "w_vs": init_depthconv_params(kpv, in_ch, kernel_size),
        "ln_gamma": 1.0 + 0.1 * jax.random.normal(kg, (in_ch, 1), jnp.float32),
        "ln_beta": 0.1 * jax.random.normal(kb, (in_ch, 1), jnp.float32),
    }

    out = conv_cross_attention_forward(
        q, k, v, params, n_head=n_head, d_k=d_k, d_v=d_v,
        kernel_size=kernel_size, dilation=dilation)
    out = jax.block_until_ready(out)

    ref = jax.block_until_ready(ref_forward(
        q, k, v, params, n_head=n_head, d_k=d_k, d_v=d_v,
        kernel_size=kernel_size, dilation=dilation))

    assert out.shape == (B, in_ch, L), out.shape
    np.testing.assert_allclose(np.asarray(out), np.asarray(ref), rtol=1e-2, atol=1e-2)
    print("KERNEL_OK")
</pallas_src>

<mosaic_0001>
module attributes {stable_mosaic.version = 11 : i64} {
  func.func @fused_cross_attn_kernel(%arg0: i32, %arg1: memref<1x8x32xf32, #tpu.memory_space<vmem>>, %arg2: memref<1x8x32xf32, #tpu.memory_space<vmem>>, %arg3: memref<1x8x32xf32, #tpu.memory_space<vmem>>, %arg4: memref<3x16x8xf32, #tpu.memory_space<vmem>>, %arg5: memref<3x16x1xf32, #tpu.memory_space<vmem>>, %arg6: memref<3x16x1xf32, #tpu.memory_space<vmem>>, %arg7: memref<3x16x1xf32, #tpu.memory_space<vmem>>, %arg8: memref<3x16x1xf32, #tpu.memory_space<vmem>>, %arg9: memref<3x16x3xf32, #tpu.memory_space<vmem>>, %arg10: memref<3x16x1xf32, #tpu.memory_space<vmem>>, %arg11: memref<3x16x1xf32, #tpu.memory_space<vmem>>, %arg12: memref<3x16x1xf32, #tpu.memory_space<vmem>>, %arg13: memref<3x16x1xf32, #tpu.memory_space<vmem>>, %arg14: memref<3x8x16xf32, #tpu.memory_space<vmem>>, %arg15: memref<3x8x1xf32, #tpu.memory_space<vmem>>, %arg16: memref<8x1xf32, #tpu.memory_space<vmem>>, %arg17: memref<8x1xf32, #tpu.memory_space<vmem>>, %arg18: memref<1x8x32xf32, #tpu.memory_space<vmem>>, %arg19: memref<8x32xf32, #tpu.memory_space<vmem>>) attributes {dimension_semantics = [#tpu.dimension_semantics<parallel>], iteration_bounds = array<i64: 2>, scalar_prefetch = 0 : i64, scratch_operands = 1 : i64, tpu.core_type = #tpu.core_type<tc>, window_params = [{transform_indices = @transform_0, window_bounds = array<i64: 1, 8, 32>}, {transform_indices = @transform_1, window_bounds = array<i64: 1, 8, 32>}, {transform_indices = @transform_2, window_bounds = array<i64: 1, 8, 32>}, {pipeline_mode = #tpu.pipeline_mode<synchronous>, transform_indices = @transform_3, window_bounds = array<i64: 3, 16, 8>}, {pipeline_mode = #tpu.pipeline_mode<synchronous>, transform_indices = @transform_4, window_bounds = array<i64: 3, 16, 1>}, {pipeline_mode = #tpu.pipeline_mode<synchronous>, transform_indices = @transform_5, window_bounds = array<i64: 3, 16, 1>}, {pipeline_mode = #tpu.pipeline_mode<synchronous>, transform_indices = @transform_6, window_bounds = array<i64: 3, 16, 1>}, {pipeline_mode = #tpu.pipeline_mode<synchronous>, transform_indices = @transform_7, window_bounds = array<i64: 3, 16, 1>}, {pipeline_mode = #tpu.pipeline_mode<synchronous>, transform_indices = @transform_8, window_bounds = array<i64: 3, 16, 3>}, {pipeline_mode = #tpu.pipeline_mode<synchronous>, transform_indices = @transform_9, window_bounds = array<i64: 3, 16, 1>}, {pipeline_mode = #tpu.pipeline_mode<synchronous>, transform_indices = @transform_10, window_bounds = array<i64: 3, 16, 1>}, {pipeline_mode = #tpu.pipeline_mode<synchronous>, transform_indices = @transform_11, window_bounds = array<i64: 3, 16, 1>}, {pipeline_mode = #tpu.pipeline_mode<synchronous>, transform_indices = @transform_12, window_bounds = array<i64: 3, 16, 1>}, {pipeline_mode = #tpu.pipeline_mode<synchronous>, transform_indices = @transform_13, window_bounds = array<i64: 3, 8, 16>}, {pipeline_mode = #tpu.pipeline_mode<synchronous>, transform_indices = @transform_14, window_bounds = array<i64: 3, 8, 1>}, {pipeline_mode = #tpu.pipeline_mode<synchronous>, transform_indices = @transform_15, window_bounds = array<i64: 8, 1>}, {pipeline_mode = #tpu.pipeline_mode<synchronous>, transform_indices = @transform_16, window_bounds = array<i64: 8, 1>}, {transform_indices = @transform_17, window_bounds = array<i64: 1, 8, 32>}]} {
    %c0 = arith.constant 0 : index
    %c0_0 = arith.constant 0 : index
    %c0_1 = arith.constant 0 : index
    %0 = vector.load %arg1[%c0, %c0_0, %c0_1] : memref<1x8x32xf32, #tpu.memory_space<vmem>>, vector<1x8x32xf32>
    %1 = vector.shape_cast %0 : vector<1x8x32xf32> to vector<8x32xf32>
    %c0_2 = arith.constant 0 : index
    %c0_3 = arith.constant 0 : index
    %c0_4 = arith.constant 0 : index
    %2 = vector.load %arg2[%c0_2, %c0_3, %c0_4] : memref<1x8x32xf32, #tpu.memory_space<vmem>>, vector<1x8x32xf32>
    %3 = vector.shape_cast %2 : vector<1x8x32xf32> to vector<8x32xf32>
    %c0_5 = arith.constant 0 : index
    %c0_6 = arith.constant 0 : index
    %c0_7 = arith.constant 0 : index
    %4 = vector.load %arg3[%c0_5, %c0_6, %c0_7] : memref<1x8x32xf32, #tpu.memory_space<vmem>>, vector<1x8x32xf32>
    %5 = vector.shape_cast %4 : vector<1x8x32xf32> to vector<8x32xf32>
    %c0_8 = arith.constant 0 : index
    %c0_9 = arith.constant 0 : index
    %c0_10 = arith.constant 0 : index
    %6 = vector.load %arg4[%c0_8, %c0_9, %c0_10] : memref<3x16x8xf32, #tpu.memory_space<vmem>>, vector<1x16x8xf32>
    %7 = vector.shape_cast %6 : vector<1x16x8xf32> to vector<16x8xf32>
    %c0_11 = arith.constant 0 : index
    %c0_12 = arith.constant 0 : index
    %c0_13 = arith.constant 0 : index
    %8 = vector.load %arg5[%c0_11, %c0_12, %c0_13] : memref<3x16x1xf32, #tpu.memory_space<vmem>>, vector<1x16x1xf32>
    %9 = vector.shape_cast %8 : vector<1x16x1xf32> to vector<16x1xf32>
    %c0_14 = arith.constant 0 : index
    %c0_15 = arith.constant 0 : index
    %c0_16 = arith.constant 0 : index
    %10 = vector.load %arg6[%c0_14, %c0_15, %c0_16] : memref<3x16x1xf32, #tpu.memory_space<vmem>>, vector<1x16x1xf32>
    %11 = vector.shape_cast %10 : vector<1x16x1xf32> to vector<16x1xf32>
    %c0_17 = arith.constant 0 : index
    %c0_18 = arith.constant 0 : index
    %c0_19 = arith.constant 0 : index
    %12 = vector.load %arg7[%c0_17, %c0_18, %c0_19] : memref<3x16x1xf32, #tpu.memory_space<vmem>>, vector<1x16x1xf32>
    %13 = vector.shape_cast %12 : vector<1x16x1xf32> to vector<16x1xf32>
    %c0_20 = arith.constant 0 : index
    %c0_21 = arith.constant 0 : index
    %c0_22 = arith.constant 0 : index
    %14 = vector.load %arg8[%c0_20, %c0_21, %c0_22] : memref<3x16x1xf32, #tpu.memory_space<vmem>>, vector<1x16x1xf32>
    %15 = vector.shape_cast %14 : vector<1x16x1xf32> to vector<16x1xf32>
    %c0_23 = arith.constant 0 : index
    %c0_24 = arith.constant 0 : index
    %c0_25 = arith.constant 0 : index
    %16 = vector.load %arg9[%c0_23, %c0_24, %c0_25] : memref<3x16x3xf32, #tpu.memory_space<vmem>>, vector<1x16x3xf32>
    %17 = vector.shape_cast %16 : vector<1x16x3xf32> to vector<16x3xf32>
    %c0_26 = arith.constant 0 : index
    %c0_27 = arith.constant 0 : index
    %c0_28 = arith.constant 0 : index
    %18 = vector.load %arg10[%c0_26, %c0_27, %c0_28] : memref<3x16x1xf32, #tpu.memory_space<vmem>>, vector<1x16x1xf32>
    %19 = vector.shape_cast %18 : vector<1x16x1xf32> to vector<16x1xf32>
    %c0_29 = arith.constant 0 : index
    %c0_30 = arith.constant 0 : index
    %c0_31 = arith.constant 0 : index
    %20 = vector.load %arg11[%c0_29, %c0_30, %c0_31] : memref<3x16x1xf32, #tpu.memory_space<vmem>>, vector<1x16x1xf32>
    %21 = vector.shape_cast %20 : vector<1x16x1xf32> to vector<16x1xf32>
    %c0_32 = arith.constant 0 : index
    %c0_33 = arith.constant 0 : index
    %c0_34 = arith.constant 0 : index
    %22 = vector.load %arg12[%c0_32, %c0_33, %c0_34] : memref<3x16x1xf32, #tpu.memory_space<vmem>>, vector<1x16x1xf32>
    %23 = vector.shape_cast %22 : vector<1x16x1xf32> to vector<16x1xf32>
    %c0_35 = arith.constant 0 : index
    %c0_36 = arith.constant 0 : index
    %c0_37 = arith.constant 0 : index
    %24 = vector.load %arg13[%c0_35, %c0_36, %c0_37] : memref<3x16x1xf32, #tpu.memory_space<vmem>>, vector<1x16x1xf32>
    %25 = vector.shape_cast %24 : vector<1x16x1xf32> to vector<16x1xf32>
    %c0_38 = arith.constant 0 : index
    %c0_39 = arith.constant 0 : index
    %c0_40 = arith.constant 0 : index
    %26 = vector.load %arg14[%c0_38, %c0_39, %c0_40] : memref<3x8x16xf32, #tpu.memory_space<vmem>>, vector<1x8x16xf32>
    %27 = vector.shape_cast %26 : vector<1x8x16xf32> to vector<8x16xf32>
    %c0_41 = arith.constant 0 : index
    %c0_42 = arith.constant 0 : index
    %c0_43 = arith.constant 0 : index
    %28 = vector.load %arg15[%c0_41, %c0_42, %c0_43] : memref<3x8x1xf32, #tpu.memory_space<vmem>>, vector<1x8x1xf32>
    %29 = vector.shape_cast %28 : vector<1x8x1xf32> to vector<8x1xf32>
    %cst = arith.constant dense<0.000000e+00> : vector<16x32xf32>
    %30 = tpu.matmul %7, %1, %cst {dimension_numbers = #tpu.dot_dimension_numbers<[1], [0], [0], [1], [0, 0, 1, 1], [], []>} : vector<16x8xf32>, vector<8x32xf32>, vector<16x32xf32> -> vector<16x32xf32>
    %31 = vector.broadcast %9 : vector<16x1xf32> to vector<16x32xf32>
    %32 = arith.addf %30, %31 : vector<16x32xf32>
    %cst_44 = arith.constant 0.000000e+00 : f32
    %33 = vector.broadcast %cst_44 : f32 to vector<16x32xf32>
    %34 = arith.cmpf ogt, %32, %33 : vector<16x32xf32>
    %35 = vector.broadcast %11 : vector<16x1xf32> to vector<16x32xf32>
    %36 = arith.mulf %35, %32 : vector<16x32xf32>
    %37 = arith.select %34, %32, %36 : vector<16x32xi1>, vector<16x32xf32>
    %38 = vector.shape_cast %37 : vector<16x32xf32> to vector<1x16x32xf32>
    %cst_45 = arith.constant dense<0.000000e+00> : vector<1xf32>
    %39 = vector.multi_reduction <add>, %38, %cst_45 [1, 2] : vector<1x16x32xf32> to vector<1xf32>
    %40 = vector.shape_cast %39 : vector<1xf32> to vector<1x1x1xf32>
    %41 = vector.extract %40[0, 0, 0] : f32 from vector<1x1x1xf32>
    %42 = arith.mulf %37, %37 : vector<16x32xf32>
    %43 = vector.shape_cast %42 : vector<16x32xf32> to vector<1x16x32xf32>
    %cst_46 = arith.constant dense<0.000000e+00> : vector<1xf32>
    %44 = vector.multi_reduction <add>, %43, %cst_46 [1, 2] : vector<1x16x32xf32> to vector<1xf32>
    %45 = vector.shape_cast %44 : vector<1xf32> to vector<1x1x1xf32>
    %46 = vector.extract %45[0, 0, 0] : f32 from vector<1x1x1xf32>
    %cst_47 = arith.constant 0.001953125 : f32
    %47 = arith.mulf %41, %cst_47 : f32
    %cst_48 = arith.constant 0.001953125 : f32
    %48 = arith.mulf %46, %cst_48 : f32
    %49 = arith.mulf %47, %47 : f32
    %50 = arith.subf %48, %49 : f32
    %51 = vector.broadcast %47 : f32 to vector<16x32xf32>
    %52 = arith.subf %37, %51 : vector<16x32xf32>
    %cst_49 = arith.constant 9.99999993E-9 : f32
    %53 = arith.addf %50, %cst_49 : f32
    %54 = math.rsqrt %53 : f32
    %55 = vector.broadcast %54 : f32 to vector<16x32xf32>
    %56 = arith.mulf %52, %55 : vector<16x32xf32>
    %57 = vector.broadcast %13 : vector<16x1xf32> to vector<16x32xf32>
    %58 = arith.mulf %56, %57 : vector<16x32xf32>
    %59 = vector.broadcast %15 : vector<16x1xf32> to vector<16x32xf32>
    %60 = arith.addf %58, %59 : vector<16x32xf32>
    %cst_50 = arith.constant 0.000000e+00 : f32
    %61 = vector.broadcast %cst_50 : f32 to vector<16x2xf32>
    %cst_51 = arith.constant 0.000000e+00 : f32
    %62 = vector.broadcast %cst_51 : f32 to vector<16x2xf32>
    %63 = tpu.concatenate %61, %60, %62 in 1 : vector<16x2xf32>, vector<16x32xf32>, vector<16x2xf32> -> vector<16x36xf32>
    %cst_52 = arith.constant 0.000000e+00 : f32
    %64 = vector.broadcast %cst_52 : f32 to vector<16x32xf32>
    %65 = vector.extract_strided_slice %17 {offsets = [0, 0], sizes = [16, 1], strides = [1, 1]} : vector<16x3xf32> to vector<16x1xf32>
    %66 = vector.extract_strided_slice %63 {offsets = [0, 0], sizes = [16, 32], strides = [1, 1]} : vector<16x36xf32> to vector<16x32xf32>
    %67 = vector.broadcast %65 : vector<16x1xf32> to vector<16x32xf32>
    %68 = arith.mulf %67, %66 : vector<16x32xf32>
    %69 = arith.addf %64, %68 : vector<16x32xf32>
    %70 = vector.extract_strided_slice %17 {offsets = [0, 1], sizes = [16, 1], strides = [1, 1]} : vector<16x3xf32> to vector<16x1xf32>
    %71 = vector.extract_strided_slice %63 {offsets = [0, 2], sizes = [16, 32], strides = [1, 1]} : vector<16x36xf32> to vector<16x32xf32>
    %72 = vector.broadcast %70 : vector<16x1xf32> to vector<16x32xf32>
    %73 = arith.mulf %72, %71 : vector<16x32xf32>
    %74 = arith.addf %69, %73 : vector<16x32xf32>
    %75 = vector.extract_strided_slice %17 {offsets = [0, 2], sizes = [16, 1], strides = [1, 1]} : vector<16x3xf32> to vector<16x1xf32>
    %76 = vector.extract_strided_slice %63 {offsets = [0, 4], sizes = [16, 32], strides = [1, 1]} : vector<16x36xf32> to vector<16x32xf32>
    %77 = vector.broadcast %75 : vector<16x1xf32> to vector<16x32xf32>
    %78 = arith.mulf %77, %76 : vector<16x32xf32>
    %79 = arith.addf %74, %78 : vector<16x32xf32>
    %80 = vector.broadcast %19 : vector<16x1xf32> to vector<16x32xf32>
    %81 = arith.addf %79, %80 : vector<16x32xf32>
    %cst_53 = arith.constant 0.000000e+00 : f32
    %82 = vector.broadcast %cst_53 : f32 to vector<16x32xf32>
    %83 = arith.cmpf ogt, %81, %82 : vector<16x32xf32>
    %84 = vector.broadcast %21 : vector<16x1xf32> to vector<16x32xf32>
    %85 = arith.mulf %84, %81 : vector<16x32xf32>
    %86 = arith.select %83, %81, %85 : vector<16x32xi1>, vector<16x32xf32>
    %87 = vector.shape_cast %86 : vector<16x32xf32> to vector<1x16x32xf32>
    %cst_54 = arith.constant dense<0.000000e+00> : vector<1xf32>
    %88 = vector.multi_reduction <add>, %87, %cst_54 [1, 2] : vector<1x16x32xf32> to vector<1xf32>
    %89 = vector.shape_cast %88 : vector<1xf32> to vector<1x1x1xf32>
    %90 = vector.extract %89[0, 0, 0] : f32 from vector<1x1x1xf32>
    %91 = arith.mulf %86, %86 : vector<16x32xf32>
    %92 = vector.shape_cast %91 : vector<16x32xf32> to vector<1x16x32xf32>
    %cst_55 = arith.constant dense<0.000000e+00> : vector<1xf32>
    %93 = vector.multi_reduction <add>, %92, %cst_55 [1, 2] : vector<1x16x32xf32> to vector<1xf32>
    %94 = vector.shape_cast %93 : vector<1xf32> to vector<1x1x1xf32>
    %95 = vector.extract %94[0, 0, 0] : f32 from vector<1x1x1xf32>
    %cst_56 = arith.constant 0.001953125 : f32
    %96 = arith.mulf %90, %cst_56 : f32
    %cst_57 = arith.constant 0.001953125 : f32
    %97 = arith.mulf %95, %cst_57 : f32
    %98 = arith.mulf %96, %96 : f32
    %99 = arith.subf %97, %98 : f32
    %100 = vector.broadcast %96 : f32 to vector<16x32xf32>
    %101 = arith.subf %86, %100 : vector<16x32xf32>
    %cst_58 = arith.constant 9.99999993E-9 : f32
    %102 = arith.addf %99, %cst_58 : f32
    %103 = math.rsqrt %102 : f32
    %104 = vector.broadcast %103 : f32 to vector<16x32xf32>
    %105 = arith.mulf %101, %104 : vector<16x32xf32>
    %106 = vector.broadcast %23 : vector<16x1xf32> to vector<16x32xf32>
    %107 = arith.mulf %105, %106 : vector<16x32xf32>
    %108 = vector.broadcast %25 : vector<16x1xf32> to vector<16x32xf32>
    %109 = arith.addf %107, %108 : vector<16x32xf32>
    %cst_59 = arith.constant dense<0.000000e+00> : vector<8x32xf32>
    %110 = tpu.matmul %27, %109, %cst_59 {dimension_numbers = #tpu.dot_dimension_numbers<[1], [0], [0], [1], [0, 0, 1, 1], [], []>} : vector<8x16xf32>, vector<16x32xf32>, vector<8x32xf32> -> vector<8x32xf32>
    %111 = vector.broadcast %29 : vector<8x1xf32> to vector<8x32xf32>
    %112 = arith.addf %110, %111 : vector<8x32xf32>
    %c1 = arith.constant 1 : index
    %c0_60 = arith.constant 0 : index
    %c0_61 = arith.constant 0 : index
    %113 = vector.load %arg4[%c1, %c0_60, %c0_61] : memref<3x16x8xf32, #tpu.memory_space<vmem>>, vector<1x16x8xf32>
    %114 = vector.shape_cast %113 : vector<1x16x8xf32> to vector<16x8xf32>
    %c1_62 = arith.constant 1 : index
    %c0_63 = arith.constant 0 : index
    %c0_64 = arith.constant 0 : index
    %115 = vector.load %arg5[%c1_62, %c0_63, %c0_64] : memref<3x16x1xf32, #tpu.memory_space<vmem>>, vector<1x16x1xf32>
    %116 = vector.shape_cast %115 : vector<1x16x1xf32> to vector<16x1xf32>
    %c1_65 = arith.constant 1 : index
    %c0_66 = arith.constant 0 : index
    %c0_67 = arith.constant 0 : index
    %117 = vector.load %arg6[%c1_65, %c0_66, %c0_67] : memref<3x16x1xf32, #tpu.memory_space<vmem>>, vector<1x16x1xf32>
    %118 = vector.shape_cast %117 : vector<1x16x1xf32> to vector<16x1xf32>
    %c1_68 = arith.constant 1 : index
    %c0_69 = arith.constant 0 : index
    %c0_70 = arith.constant 0 : index
    %119 = vector.load %arg7[%c1_68, %c0_69, %c0_70] : memref<3x16x1xf32, #tpu.memory_space<vmem>>, vector<1x16x1xf32>
    %120 = vector.shape_cast %119 : vector<1x16x1xf32> to vector<16x1xf32>
    %c1_71 = arith.constant 1 : index
    %c0_72 = arith.constant 0 : index
    %c0_73 = arith.constant 0 : index
    %121 = vector.load %arg8[%c1_71, %c0_72, %c0_73] : memref<3x16x1xf32, #tpu.memory_space<vmem>>, vector<1x16x1xf32>
    %122 = vector.shape_cast %121 : vector<1x16x1xf32> to vector<16x1xf32>
    %c1_74 = arith.constant 1 : index
    %c0_75 = arith.constant 0 : index
    %c0_76 = arith.constant 0 : index
    %123 = vector.load %arg9[%c1_74, %c0_75, %c0_76] : memref<3x16x3xf32, #tpu.memory_space<vmem>>, vector<1x16x3xf32>
    %124 = vector.shape_cast %123 : vector<1x16x3xf32> to vector<16x3xf32>
    %c1_77 = arith.constant 1 : index
    %c0_78 = arith.constant 0 : index
    %c0_79 = arith.constant 0 : index
    %125 = vector.load %arg10[%c1_77, %c0_78, %c0_79] : memref<3x16x1xf32, #tpu.memory_space<vmem>>, vector<1x16x1xf32>
    %126 = vector.shape_cast %125 : vector<1x16x1xf32> to vector<16x1xf32>
    %c1_80 = arith.constant 1 : index
    %c0_81 = arith.constant 0 : index
    %c0_82 = arith.constant 0 : index
    %127 = vector.load %arg11[%c1_80, %c0_81, %c0_82] : memref<3x16x1xf32, #tpu.memory_space<vmem>>, vector<1x16x1xf32>
    %128 = vector.shape_cast %127 : vector<1x16x1xf32> to vector<16x1xf32>
    %c1_83 = arith.constant 1 : index
    %c0_84 = arith.constant 0 : index
    %c0_85 = arith.constant 0 : index
    %129 = vector.load %arg12[%c1_83, %c0_84, %c0_85] : memref<3x16x1xf32, #tpu.memory_space<vmem>>, vector<1x16x1xf32>
    %130 = vector.shape_cast %129 : vector<1x16x1xf32> to vector<16x1xf32>
    %c1_86 = arith.constant 1 : index
    %c0_87 = arith.constant 0 : index
    %c0_88 = arith.constant 0 : index
    %131 = vector.load %arg13[%c1_86, %c0_87, %c0_88] : memref<3x16x1xf32, #tpu.memory_space<vmem>>, vector<1x16x1xf32>
    %132 = vector.shape_cast %131 : vector<1x16x1xf32> to vector<16x1xf32>
    %c1_89 = arith.constant 1 : index
    %c0_90 = arith.constant 0 : index
    %c0_91 = arith.constant 0 : index
    %133 = vector.load %arg14[%c1_89, %c0_90, %c0_91] : memref<3x8x16xf32, #tpu.memory_space<vmem>>, vector<1x8x16xf32>
    %134 = vector.shape_cast %133 : vector<1x8x16xf32> to vector<8x16xf32>
    %c1_92 = arith.constant 1 : index
    %c0_93 = arith.constant 0 : index
    %c0_94 = arith.constant 0 : index
    %135 = vector.load %arg15[%c1_92, %c0_93, %c0_94] : memref<3x8x1xf32, #tpu.memory_space<vmem>>, vector<1x8x1xf32>
    %136 = vector.shape_cast %135 : vector<1x8x1xf32> to vector<8x1xf32>
    %cst_95 = arith.constant dense<0.000000e+00> : vector<16x32xf32>
    %137 = tpu.matmul %114, %3, %cst_95 {dimension_numbers = #tpu.dot_dimension_numbers<[1], [0], [0], [1], [0, 0, 1, 1], [], []>} : vector<16x8xf32>, vector<8x32xf32>, vector<16x32xf32> -> vector<16x32xf32>
    %138 = vector.broadcast %116 : vector<16x1xf32> to vector<16x32xf32>
    %139 = arith.addf %137, %138 : vector<16x32xf32>
    %cst_96 = arith.constant 0.000000e+00 : f32
    %140 = vector.broadcast %cst_96 : f32 to vector<16x32xf32>
    %141 = arith.cmpf ogt, %139, %140 : vector<16x32xf32>
    %142 = vector.broadcast %118 : vector<16x1xf32> to vector<16x32xf32>
    %143 = arith.mulf %142, %139 : vector<16x32xf32>
    %144 = arith.select %141, %139, %143 : vector<16x32xi1>, vector<16x32xf32>
    %145 = vector.shape_cast %144 : vector<16x32xf32> to vector<1x16x32xf32>
    %cst_97 = arith.constant dense<0.000000e+00> : vector<1xf32>
    %146 = vector.multi_reduction <add>, %145, %cst_97 [1, 2] : vector<1x16x32xf32> to vector<1xf32>
    %147 = vector.shape_cast %146 : vector<1xf32> to vector<1x1x1xf32>
    %148 = vector.extract %147[0, 0, 0] : f32 from vector<1x1x1xf32>
    %149 = arith.mulf %144, %144 : vector<16x32xf32>
    %150 = vector.shape_cast %149 : vector<16x32xf32> to vector<1x16x32xf32>
    %cst_98 = arith.constant dense<0.000000e+00> : vector<1xf32>
    %151 = vector.multi_reduction <add>, %150, %cst_98 [1, 2] : vector<1x16x32xf32> to vector<1xf32>
    %152 = vector.shape_cast %151 : vector<1xf32> to vector<1x1x1xf32>
    %153 = vector.extract %152[0, 0, 0] : f32 from vector<1x1x1xf32>
    %cst_99 = arith.constant 0.001953125 : f32
    %154 = arith.mulf %148, %cst_99 : f32
    %cst_100 = arith.constant 0.001953125 : f32
    %155 = arith.mulf %153, %cst_100 : f32
    %156 = arith.mulf %154, %154 : f32
    %157 = arith.subf %155, %156 : f32
    %158 = vector.broadcast %154 : f32 to vector<16x32xf32>
    %159 = arith.subf %144, %158 : vector<16x32xf32>
    %cst_101 = arith.constant 9.99999993E-9 : f32
    %160 = arith.addf %157, %cst_101 : f32
    %161 = math.rsqrt %160 : f32
    %162 = vector.broadcast %161 : f32 to vector<16x32xf32>
    %163 = arith.mulf %159, %162 : vector<16x32xf32>
    %164 = vector.broadcast %120 : vector<16x1xf32> to vector<16x32xf32>
    %165 = arith.mulf %163, %164 : vector<16x32xf32>
    %166 = vector.broadcast %122 : vector<16x1xf32> to vector<16x32xf32>
    %167 = arith.addf %165, %166 : vector<16x32xf32>
    %cst_102 = arith.constant 0.000000e+00 : f32
    %168 = vector.broadcast %cst_102 : f32 to vector<16x2xf32>
    %cst_103 = arith.constant 0.000000e+00 : f32
    %169 = vector.broadcast %cst_103 : f32 to vector<16x2xf32>
    %170 = tpu.concatenate %168, %167, %169 in 1 : vector<16x2xf32>, vector<16x32xf32>, vector<16x2xf32> -> vector<16x36xf32>
    %cst_104 = arith.constant 0.000000e+00 : f32
    %171 = vector.broadcast %cst_104 : f32 to vector<16x32xf32>
    %172 = vector.extract_strided_slice %124 {offsets = [0, 0], sizes = [16, 1], strides = [1, 1]} : vector<16x3xf32> to vector<16x1xf32>
    %173 = vector.extract_strided_slice %170 {offsets = [0, 0], sizes = [16, 32], strides = [1, 1]} : vector<16x36xf32> to vector<16x32xf32>
    %174 = vector.broadcast %172 : vector<16x1xf32> to vector<16x32xf32>
    %175 = arith.mulf %174, %173 : vector<16x32xf32>
    %176 = arith.addf %171, %175 : vector<16x32xf32>
    %177 = vector.extract_strided_slice %124 {offsets = [0, 1], sizes = [16, 1], strides = [1, 1]} : vector<16x3xf32> to vector<16x1xf32>
    %178 = vector.extract_strided_slice %170 {offsets = [0, 2], sizes = [16, 32], strides = [1, 1]} : vector<16x36xf32> to vector<16x32xf32>
    %179 = vector.broadcast %177 : vector<16x1xf32> to vector<16x32xf32>
    %180 = arith.mulf %179, %178 : vector<16x32xf32>
    %181 = arith.addf %176, %180 : vector<16x32xf32>
    %182 = vector.extract_strided_slice %124 {offsets = [0, 2], sizes = [16, 1], strides = [1, 1]} : vector<16x3xf32> to vector<16x1xf32>
    %183 = vector.extract_strided_slice %170 {offsets = [0, 4], sizes = [16, 32], strides = [1, 1]} : vector<16x36xf32> to vector<16x32xf32>
    %184 = vector.broadcast %182 : vector<16x1xf32> to vector<16x32xf32>
    %185 = arith.mulf %184, %183 : vector<16x32xf32>
    %186 = arith.addf %181, %185 : vector<16x32xf32>
    %187 = vector.broadcast %126 : vector<16x1xf32> to vector<16x32xf32>
    %188 = arith.addf %186, %187 : vector<16x32xf32>
    %cst_105 = arith.constant 0.000000e+00 : f32
    %189 = vector.broadcast %cst_105 : f32 to vector<16x32xf32>
    %190 = arith.cmpf ogt, %188, %189 : vector<16x32xf32>
    %191 = vector.broadcast %128 : vector<16x1xf32> to vector<16x32xf32>
    %192 = arith.mulf %191, %188 : vector<16x32xf32>
    %193 = arith.select %190, %188, %192 : vector<16x32xi1>, vector<16x32xf32>
    %194 = vector.shape_cast %193 : vector<16x32xf32> to vector<1x16x32xf32>
    %cst_106 = arith.constant dense<0.000000e+00> : vector<1xf32>
    %195 = vector.multi_reduction <add>, %194, %cst_106 [1, 2] : vector<1x16x32xf32> to vector<1xf32>
    %196 = vector.shape_cast %195 : vector<1xf32> to vector<1x1x1xf32>
    %197 = vector.extract %196[0, 0, 0] : f32 from vector<1x1x1xf32>
    %198 = arith.mulf %193, %193 : vector<16x32xf32>
    %199 = vector.shape_cast %198 : vector<16x32xf32> to vector<1x16x32xf32>
    %cst_107 = arith.constant dense<0.000000e+00> : vector<1xf32>
    %200 = vector.multi_reduction <add>, %199, %cst_107 [1, 2] : vector<1x16x32xf32> to vector<1xf32>
    %201 = vector.shape_cast %200 : vector<1xf32> to vector<1x1x1xf32>
    %202 = vector.extract %201[0, 0, 0] : f32 from vector<1x1x1xf32>
    %cst_108 = arith.constant 0.001953125 : f32
    %203 = arith.mulf %197, %cst_108 : f32
    %cst_109 = arith.constant 0.001953125 : f32
    %204 = arith.mulf %202, %cst_109 : f32
    %205 = arith.mulf %203, %203 : f32
    %206 = arith.subf %204, %205 : f32
    %207 = vector.broadcast %203 : f32 to vector<16x32xf32>
    %208 = arith.subf %193, %207 : vector<16x32xf32>
    %cst_110 = arith.constant 9.99999993E-9 : f32
    %209 = arith.addf %206, %cst_110 : f32
    %210 = math.rsqrt %209 : f32
    %211 = vector.broadcast %210 : f32 to vector<16x32xf32>
    %212 = arith.mulf %208, %211 : vector<16x32xf32>
    %213 = vector.broadcast %130 : vector<16x1xf32> to vector<16x32xf32>
    %214 = arith.mulf %212, %213 : vector<16x32xf32>
    %215 = vector.broadcast %132 : vector<16x1xf32> to vector<16x32xf32>
    %216 = arith.addf %214, %215 : vector<16x32xf32>
    %cst_111 = arith.constant dense<0.000000e+00> : vector<8x32xf32>
    %217 = tpu.matmul %134, %216, %cst_111 {dimension_numbers = #tpu.dot_dimension_numbers<[1], [0], [0], [1], [0, 0, 1, 1], [], []>} : vector<8x16xf32>, vector<16x32xf32>, vector<8x32xf32> -> vector<8x32xf32>
    %218 = vector.broadcast %136 : vector<8x1xf32> to vector<8x32xf32>
    %219 = arith.addf %217, %218 : vector<8x32xf32>
    %c2 = arith.constant 2 : index
    %c0_112 = arith.constant 0 : index
    %c0_113 = arith.constant 0 : index
    %220 = vector.load %arg4[%c2, %c0_112, %c0_113] : memref<3x16x8xf32, #tpu.memory_space<vmem>>, vector<1x16x8xf32>
    %221 = vector.shape_cast %220 : vector<1x16x8xf32> to vector<16x8xf32>
    %c2_114 = arith.constant 2 : index
    %c0_115 = arith.constant 0 : index
    %c0_116 = arith.constant 0 : index
    %222 = vector.load %arg5[%c2_114, %c0_115, %c0_116] : memref<3x16x1xf32, #tpu.memory_space<vmem>>, vector<1x16x1xf32>
    %223 = vector.shape_cast %222 : vector<1x16x1xf32> to vector<16x1xf32>
    %c2_117 = arith.constant 2 : index
    %c0_118 = arith.constant 0 : index
    %c0_119 = arith.constant 0 : index
    %224 = vector.load %arg6[%c2_117, %c0_118, %c0_119] : memref<3x16x1xf32, #tpu.memory_space<vmem>>, vector<1x16x1xf32>
    %225 = vector.shape_cast %224 : vector<1x16x1xf32> to vector<16x1xf32>
    %c2_120 = arith.constant 2 : index
    %c0_121 = arith.constant 0 : index
    %c0_122 = arith.constant 0 : index
    %226 = vector.load %arg7[%c2_120, %c0_121, %c0_122] : memref<3x16x1xf32, #tpu.memory_space<vmem>>, vector<1x16x1xf32>
    %227 = vector.shape_cast %226 : vector<1x16x1xf32> to vector<16x1xf32>
    %c2_123 = arith.constant 2 : index
    %c0_124 = arith.constant 0 : index
    %c0_125 = arith.constant 0 : index
    %228 = vector.load %arg8[%c2_123, %c0_124, %c0_125] : memref<3x16x1xf32, #tpu.memory_space<vmem>>, vector<1x16x1xf32>
    %229 = vector.shape_cast %228 : vector<1x16x1xf32> to vector<16x1xf32>
    %c2_126 = arith.constant 2 : index
    %c0_127 = arith.constant 0 : index
    %c0_128 = arith.constant 0 : index
    %230 = vector.load %arg9[%c2_126, %c0_127, %c0_128] : memref<3x16x3xf32, #tpu.memory_space<vmem>>, vector<1x16x3xf32>
    %231 = vector.shape_cast %230 : vector<1x16x3xf32> to vector<16x3xf32>
    %c2_129 = arith.constant 2 : index
    %c0_130 = arith.constant 0 : index
    %c0_131 = arith.constant 0 : index
    %232 = vector.load %arg10[%c2_129, %c0_130, %c0_131] : memref<3x16x1xf32, #tpu.memory_space<vmem>>, vector<1x16x1xf32>
    %233 = vector.shape_cast %232 : vector<1x16x1xf32> to vector<16x1xf32>
    %c2_132 = arith.constant 2 : index
    %c0_133 = arith.constant 0 : index
    %c0_134 = arith.constant 0 : index
    %234 = vector.load %arg11[%c2_132, %c0_133, %c0_134] : memref<3x16x1xf32, #tpu.memory_space<vmem>>, vector<1x16x1xf32>
    %235 = vector.shape_cast %234 : vector<1x16x1xf32> to vector<16x1xf32>
    %c2_135 = arith.constant 2 : index
    %c0_136 = arith.constant 0 : index
    %c0_137 = arith.constant 0 : index
    %236 = vector.load %arg12[%c2_135, %c0_136, %c0_137] : memref<3x16x1xf32, #tpu.memory_space<vmem>>, vector<1x16x1xf32>
    %237 = vector.shape_cast %236 : vector<1x16x1xf32> to vector<16x1xf32>
    %c2_138 = arith.constant 2 : index
    %c0_139 = arith.constant 0 : index
    %c0_140 = arith.constant 0 : index
    %238 = vector.load %arg13[%c2_138, %c0_139, %c0_140] : memref<3x16x1xf32, #tpu.memory_space<vmem>>, vector<1x16x1xf32>
    %239 = vector.shape_cast %238 : vector<1x16x1xf32> to vector<16x1xf32>
    %c2_141 = arith.constant 2 : index
    %c0_142 = arith.constant 0 : index
    %c0_143 = arith.constant 0 : index
    %240 = vector.load %arg14[%c2_141, %c0_142, %c0_143] : memref<3x8x16xf32, #tpu.memory_space<vmem>>, vector<1x8x16xf32>
    %241 = vector.shape_cast %240 : vector<1x8x16xf32> to vector<8x16xf32>
    %c2_144 = arith.constant 2 : index
    %c0_145 = arith.constant 0 : index
    %c0_146 = arith.constant 0 : index
    %242 = vector.load %arg15[%c2_144, %c0_145, %c0_146] : memref<3x8x1xf32, #tpu.memory_space<vmem>>, vector<1x8x1xf32>
    %243 = vector.shape_cast %242 : vector<1x8x1xf32> to vector<8x1xf32>
    %cst_147 = arith.constant dense<0.000000e+00> : vector<16x32xf32>
    %244 = tpu.matmul %221, %5, %cst_147 {dimension_numbers = #tpu.dot_dimension_numbers<[1], [0], [0], [1], [0, 0, 1, 1], [], []>} : vector<16x8xf32>, vector<8x32xf32>, vector<16x32xf32> -> vector<16x32xf32>
    %245 = vector.broadcast %223 : vector<16x1xf32> to vector<16x32xf32>
    %246 = arith.addf %244, %245 : vector<16x32xf32>
    %cst_148 = arith.constant 0.000000e+00 : f32
    %247 = vector.broadcast %cst_148 : f32 to vector<16x32xf32>
    %248 = arith.cmpf ogt, %246, %247 : vector<16x32xf32>
    %249 = vector.broadcast %225 : vector<16x1xf32> to vector<16x32xf32>
    %250 = arith.mulf %249, %246 : vector<16x32xf32>
    %251 = arith.select %248, %246, %250 : vector<16x32xi1>, vector<16x32xf32>
    %252 = vector.shape_cast %251 : vector<16x32xf32> to vector<1x16x32xf32>
    %cst_149 = arith.constant dense<0.000000e+00> : vector<1xf32>
    %253 = vector.multi_reduction <add>, %252, %cst_149 [1, 2] : vector<1x16x32xf32> to vector<1xf32>
    %254 = vector.shape_cast %253 : vector<1xf32> to vector<1x1x1xf32>
    %255 = vector.extract %254[0, 0, 0] : f32 from vector<1x1x1xf32>
    %256 = arith.mulf %251, %251 : vector<16x32xf32>
    %257 = vector.shape_cast %256 : vector<16x32xf32> to vector<1x16x32xf32>
    %cst_150 = arith.constant dense<0.000000e+00> : vector<1xf32>
    %258 = vector.multi_reduction <add>, %257, %cst_150 [1, 2] : vector<1x16x32xf32> to vector<1xf32>
    %259 = vector.shape_cast %258 : vector<1xf32> to vector<1x1x1xf32>
    %260 = vector.extract %259[0, 0, 0] : f32 from vector<1x1x1xf32>
    %cst_151 = arith.constant 0.001953125 : f32
    %261 = arith.mulf %255, %cst_151 : f32
    %cst_152 = arith.constant 0.001953125 : f32
    %262 = arith.mulf %260, %cst_152 : f32
    %263 = arith.mulf %261, %261 : f32
    %264 = arith.subf %262, %263 : f32
    %265 = vector.broadcast %261 : f32 to vector<16x32xf32>
    %266 = arith.subf %251, %265 : vector<16x32xf32>
    %cst_153 = arith.constant 9.99999993E-9 : f32
    %267 = arith.addf %264, %cst_153 : f32
    %268 = math.rsqrt %267 : f32
    %269 = vector.broadcast %268 : f32 to vector<16x32xf32>
    %270 = arith.mulf %266, %269 : vector<16x32xf32>
    %271 = vector.broadcast %227 : vector<16x1xf32> to vector<16x32xf32>
    %272 = arith.mulf %270, %271 : vector<16x32xf32>
    %273 = vector.broadcast %229 : vector<16x1xf32> to vector<16x32xf32>
    %274 = arith.addf %272, %273 : vector<16x32xf32>
    %cst_154 = arith.constant 0.000000e+00 : f32
    %275 = vector.broadcast %cst_154 : f32 to vector<16x2xf32>
    %cst_155 = arith.constant 0.000000e+00 : f32
    %276 = vector.broadcast %cst_155 : f32 to vector<16x2xf32>
    %277 = tpu.concatenate %275, %274, %276 in 1 : vector<16x2xf32>, vector<16x32xf32>, vector<16x2xf32> -> vector<16x36xf32>
    %cst_156 = arith.constant 0.000000e+00 : f32
    %278 = vector.broadcast %cst_156 : f32 to vector<16x32xf32>
    %279 = vector.extract_strided_slice %231 {offsets = [0, 0], sizes = [16, 1], strides = [1, 1]} : vector<16x3xf32> to vector<16x1xf32>
    %280 = vector.extract_strided_slice %277 {offsets = [0, 0], sizes = [16, 32], strides = [1, 1]} : vector<16x36xf32> to vector<16x32xf32>
    %281 = vector.broadcast %279 : vector<16x1xf32> to vector<16x32xf32>
    %282 = arith.mulf %281, %280 : vector<16x32xf32>
    %283 = arith.addf %278, %282 : vector<16x32xf32>
    %284 = vector.extract_strided_slice %231 {offsets = [0, 1], sizes = [16, 1], strides = [1, 1]} : vector<16x3xf32> to vector<16x1xf32>
    %285 = vector.extract_strided_slice %277 {offsets = [0, 2], sizes = [16, 32], strides = [1, 1]} : vector<16x36xf32> to vector<16x32xf32>
    %286 = vector.broadcast %284 : vector<16x1xf32> to vector<16x32xf32>
    %287 = arith.mulf %286, %285 : vector<16x32xf32>
    %288 = arith.addf %283, %287 : vector<16x32xf32>
    %289 = vector.extract_strided_slice %231 {offsets = [0, 2], sizes = [16, 1], strides = [1, 1]} : vector<16x3xf32> to vector<16x1xf32>
    %290 = vector.extract_strided_slice %277 {offsets = [0, 4], sizes = [16, 32], strides = [1, 1]} : vector<16x36xf32> to vector<16x32xf32>
    %291 = vector.broadcast %289 : vector<16x1xf32> to vector<16x32xf32>
    %292 = arith.mulf %291, %290 : vector<16x32xf32>
    %293 = arith.addf %288, %292 : vector<16x32xf32>
    %294 = vector.broadcast %233 : vector<16x1xf32> to vector<16x32xf32>
    %295 = arith.addf %293, %294 : vector<16x32xf32>
    %cst_157 = arith.constant 0.000000e+00 : f32
    %296 = vector.broadcast %cst_157 : f32 to vector<16x32xf32>
    %297 = arith.cmpf ogt, %295, %296 : vector<16x32xf32>
    %298 = vector.broadcast %235 : vector<16x1xf32> to vector<16x32xf32>
    %299 = arith.mulf %298, %295 : vector<16x32xf32>
    %300 = arith.select %297, %295, %299 : vector<16x32xi1>, vector<16x32xf32>
    %301 = vector.shape_cast %300 : vector<16x32xf32> to vector<1x16x32xf32>
    %cst_158 = arith.constant dense<0.000000e+00> : vector<1xf32>
    %302 = vector.multi_reduction <add>, %301, %cst_158 [1, 2] : vector<1x16x32xf32> to vector<1xf32>
    %303 = vector.shape_cast %302 : vector<1xf32> to vector<1x1x1xf32>
    %304 = vector.extract %303[0, 0, 0] : f32 from vector<1x1x1xf32>
    %305 = arith.mulf %300, %300 : vector<16x32xf32>
    %306 = vector.shape_cast %305 : vector<16x32xf32> to vector<1x16x32xf32>
    %cst_159 = arith.constant dense<0.000000e+00> : vector<1xf32>
    %307 = vector.multi_reduction <add>, %306, %cst_159 [1, 2] : vector<1x16x32xf32> to vector<1xf32>
    %308 = vector.shape_cast %307 : vector<1xf32> to vector<1x1x1xf32>
    %309 = vector.extract %308[0, 0, 0] : f32 from vector<1x1x1xf32>
    %cst_160 = arith.constant 0.001953125 : f32
    %310 = arith.mulf %304, %cst_160 : f32
    %cst_161 = arith.constant 0.001953125 : f32
    %311 = arith.mulf %309, %cst_161 : f32
    %312 = arith.mulf %310, %310 : f32
    %313 = arith.subf %311, %312 : f32
    %314 = vector.broadcast %310 : f32 to vector<16x32xf32>
    %315 = arith.subf %300, %314 : vector<16x32xf32>
    %cst_162 = arith.constant 9.99999993E-9 : f32
    %316 = arith.addf %313, %cst_162 : f32
    %317 = math.rsqrt %316 : f32
    %318 = vector.broadcast %317 : f32 to vector<16x32xf32>
    %319 = arith.mulf %315, %318 : vector<16x32xf32>
    %320 = vector.broadcast %237 : vector<16x1xf32> to vector<16x32xf32>
    %321 = arith.mulf %319, %320 : vector<16x32xf32>
    %322 = vector.broadcast %239 : vector<16x1xf32> to vector<16x32xf32>
    %323 = arith.addf %321, %322 : vector<16x32xf32>
    %cst_163 = arith.constant dense<0.000000e+00> : vector<8x32xf32>
    %324 = tpu.matmul %241, %323, %cst_163 {dimension_numbers = #tpu.dot_dimension_numbers<[1], [0], [0], [1], [0, 0, 1, 1], [], []>} : vector<8x16xf32>, vector<16x32xf32>, vector<8x32xf32> -> vector<8x32xf32>
    %325 = vector.broadcast %243 : vector<8x1xf32> to vector<8x32xf32>
    %326 = arith.addf %324, %325 : vector<8x32xf32>
    %cst_164 = arith.constant 2.500000e-01 : f32
    %327 = vector.broadcast %cst_164 : f32 to vector<8x32xf32>
    %328 = arith.mulf %112, %327 : vector<8x32xf32>
    %329 = tpu.transpose %219, [1, 0] : vector<8x32xf32> -> vector<32x8xf32>
    %330 = vector.extract_strided_slice %328 {offsets = [0, 0], sizes = [8, 16], strides = [1, 1]} : vector<8x32xf32> to vector<8x16xf32>
    %331 = vector.extract_strided_slice %329 {offsets = [0, 0], sizes = [16, 8], strides = [1, 1]} : vector<32x8xf32> to vector<16x8xf32>
    %332 = vector.extract_strided_slice %326 {offsets = [0, 0], sizes = [8, 16], strides = [1, 1]} : vector<8x32xf32> to vector<8x16xf32>
    %cst_165 = arith.constant dense<0.000000e+00> : vector<8x8xf32>
    %333 = tpu.matmul %330, %331, %cst_165 {dimension_numbers = #tpu.dot_dimension_numbers<[1], [0], [0], [1], [0, 0, 1, 1], [], []>} : vector<8x16xf32>, vector<16x8xf32>, vector<8x8xf32> -> vector<8x8xf32>
    %cst_166 = arith.constant dense<0xFF800000> : vector<8xf32>
    %334 = vector.multi_reduction <maximumf>, %333, %cst_166 [1] : vector<8x8xf32> to vector<8xf32>
    %335 = vector.shape_cast %334 : vector<8xf32> to vector<8x1xf32>
    %336 = vector.broadcast %335 : vector<8x1xf32> to vector<8x8xf32>
    %337 = arith.subf %333, %336 : vector<8x8xf32>
    %338 = math.exp %337 : vector<8x8xf32>
    %cst_167 = arith.constant dense<0.000000e+00> : vector<8xf32>
    %339 = vector.multi_reduction <add>, %338, %cst_167 [1] : vector<8x8xf32> to vector<8xf32>
    %340 = vector.shape_cast %339 : vector<8xf32> to vector<8x1xf32>
    %341 = tpu.reciprocal %340 {approx = true} : vector<8x1xf32> -> vector<8x1xf32>
    %342 = vector.broadcast %341 : vector<8x1xf32> to vector<8x8xf32>
    %343 = arith.mulf %338, %342 : vector<8x8xf32>
    %cst_168 = arith.constant dense<0.000000e+00> : vector<8x16xf32>
    %344 = tpu.matmul %343, %332, %cst_168 {dimension_numbers = #tpu.dot_dimension_numbers<[1], [0], [0], [1], [0, 0, 1, 1], [], []>} : vector<8x8xf32>, vector<8x16xf32>, vector<8x16xf32> -> vector<8x16xf32>
    %c0_169 = arith.constant 0 : index
    %c0_170 = arith.constant 0 : index
    %345 = vector.load %arg19[%c0_169, %c0_170] : memref<8x32xf32, #tpu.memory_space<vmem>>, vector<8x16xf32>
    tpu.vector_store %arg19[%c0_169, %c0_170], %344 {strides = array<i32>} : memref<8x32xf32, #tpu.memory_space<vmem>>, vector<8x16xf32>,
    %346 = vector.extract_strided_slice %328 {offsets = [0, 16], sizes = [8, 16], strides = [1, 1]} : vector<8x32xf32> to vector<8x16xf32>
    %347 = vector.extract_strided_slice %329 {offsets = [16, 0], sizes = [16, 8], strides = [1, 1]} : vector<32x8xf32> to vector<16x8xf32>
    %348 = vector.extract_strided_slice %326 {offsets = [0, 16], sizes = [8, 16], strides = [1, 1]} : vector<8x32xf32> to vector<8x16xf32>
    %cst_171 = arith.constant dense<0.000000e+00> : vector<8x8xf32>
    %349 = tpu.matmul %346, %347, %cst_171 {dimension_numbers = #tpu.dot_dimension_numbers<[1], [0], [0], [1], [0, 0, 1, 1], [], []>} : vector<8x16xf32>, vector<16x8xf32>, vector<8x8xf32> -> vector<8x8xf32>
    %cst_172 = arith.constant dense<0xFF800000> : vector<8xf32>
    %350 = vector.multi_reduction <maximumf>, %349, %cst_172 [1] : vector<8x8xf32> to vector<8xf32>
    %351 = vector.shape_cast %350 : vector<8xf32> to vector<8x1xf32>
    %352 = vector.broadcast %351 : vector<8x1xf32> to vector<8x8xf32>
    %353 = arith.subf %349, %352 : vector<8x8xf32>
    %354 = math.exp %353 : vector<8x8xf32>
    %cst_173 = arith.constant dense<0.000000e+00> : vector<8xf32>
    %355 = vector.multi_reduction <add>, %354, %cst_173 [1] : vector<8x8xf32> to vector<8xf32>
    %356 = vector.shape_cast %355 : vector<8xf32> to vector<8x1xf32>
    %357 = tpu.reciprocal %356 {approx = true} : vector<8x1xf32> -> vector<8x1xf32>
    %358 = vector.broadcast %357 : vector<8x1xf32> to vector<8x8xf32>
    %359 = arith.mulf %354, %358 : vector<8x8xf32>
    %cst_174 = arith.constant dense<0.000000e+00> : vector<8x16xf32>
    %360 = tpu.matmul %359, %348, %cst_174 {dimension_numbers = #tpu.dot_dimension_numbers<[1], [0], [0], [1], [0, 0, 1, 1], [], []>} : vector<8x8xf32>, vector<8x16xf32>, vector<8x16xf32> -> vector<8x16xf32>
    %c0_175 = arith.constant 0 : index
    %c16 = arith.constant 16 : index
    %361 = vector.load %arg19[%c0_175, %c16] : memref<8x32xf32, #tpu.memory_space<vmem>>, vector<8x16xf32>
    tpu.vector_store %arg19[%c0_175, %c16], %360 {strides = array<i32>} : memref<8x32xf32, #tpu.memory_space<vmem>>, vector<8x16xf32>,
    %c0_176 = arith.constant 0 : index
    %c0_177 = arith.constant 0 : index
    %362 = vector.load %arg19[%c0_176, %c0_177] : memref<8x32xf32, #tpu.memory_space<vmem>>, vector<8x32xf32>
    %363 = arith.addf %362, %5 : vector<8x32xf32>
    %c0_178 = arith.constant 0 : index
    %c0_179 = arith.constant 0 : index
    %364 = vector.load %arg16[%c0_178, %c0_179] : memref<8x1xf32, #tpu.memory_space<vmem>>, vector<8x1xf32>
    %c0_180 = arith.constant 0 : index
    %c0_181 = arith.constant 0 : index
    %365 = vector.load %arg17[%c0_180, %c0_181] : memref<8x1xf32, #tpu.memory_space<vmem>>, vector<8x1xf32>
    %366 = vector.shape_cast %363 : vector<8x32xf32> to vector<1x8x32xf32>
    %cst_182 = arith.constant dense<0.000000e+00> : vector<1xf32>
    %367 = vector.multi_reduction <add>, %366, %cst_182 [1, 2] : vector<1x8x32xf32> to vector<1xf32>
    %368 = vector.shape_cast %367 : vector<1xf32> to vector<1x1x1xf32>
    %369 = vector.extract %368[0, 0, 0] : f32 from vector<1x1x1xf32>
    %370 = arith.mulf %363, %363 : vector<8x32xf32>
    %371 = vector.shape_cast %370 : vector<8x32xf32> to vector<1x8x32xf32>
    %cst_183 = arith.constant dense<0.000000e+00> : vector<1xf32>
    %372 = vector.multi_reduction <add>, %371, %cst_183 [1, 2] : vector<1x8x32xf32> to vector<1xf32>
    %373 = vector.shape_cast %372 : vector<1xf32> to vector<1x1x1xf32>
    %374 = vector.extract %373[0, 0, 0] : f32 from vector<1x1x1xf32>
    %cst_184 = arith.constant 3.906250e-03 : f32
    %375 = arith.mulf %369, %cst_184 : f32
    %cst_185 = arith.constant 3.906250e-03 : f32
    %376 = arith.mulf %374, %cst_185 : f32
    %377 = arith.mulf %375, %375 : f32
    %378 = arith.subf %376, %377 : f32
    %379 = vector.broadcast %375 : f32 to vector<8x32xf32>
    %380 = arith.subf %363, %379 : vector<8x32xf32>
    %cst_186 = arith.constant 9.99999993E-9 : f32
    %381 = arith.addf %378, %cst_186 : f32
    %382 = math.rsqrt %381 : f32
    %383 = vector.broadcast %382 : f32 to vector<8x32xf32>
    %384 = arith.mulf %380, %383 : vector<8x32xf32>
    %385 = vector.broadcast %364 : vector<8x1xf32> to vector<8x32xf32>
    %386 = arith.mulf %384, %385 : vector<8x32xf32>
    %387 = vector.broadcast %365 : vector<8x1xf32> to vector<8x32xf32>
    %388 = arith.addf %386, %387 : vector<8x32xf32>
    %c0_187 = arith.constant 0 : index
    %c0_188 = arith.constant 0 : index
    %c0_189 = arith.constant 0 : index
    %389 = vector.load %arg18[%c0_187, %c0_188, %c0_189] : memref<1x8x32xf32, #tpu.memory_space<vmem>>, vector<1x8x32xf32>
    %390 = vector.shape_cast %389 : vector<1x8x32xf32> to vector<8x32xf32>
    %391 = vector.shape_cast %388 : vector<8x32xf32> to vector<1x8x32xf32>
    tpu.vector_store %arg18[%c0_187, %c0_188, %c0_189], %391 {strides = array<i32>} : memref<1x8x32xf32, #tpu.memory_space<vmem>>, vector<1x8x32xf32>,
    return
  }
  func.func @transform_0(%arg0: i32) -> (i32, i32, i32) {
    %c0_i32 = arith.constant 0 : i32
    %c0_i32_0 = arith.constant 0 : i32
    %c0_i32_1 = arith.constant 0 : i32
    return %arg0, %c0_i32, %c0_i32_0 : i32, i32, i32
  }
  func.func @transform_1(%arg0: i32) -> (i32, i32, i32) {
    %c0_i32 = arith.constant 0 : i32
    %c0_i32_0 = arith.constant 0 : i32
    %c0_i32_1 = arith.constant 0 : i32
    return %arg0, %c0_i32, %c0_i32_0 : i32, i32, i32
  }
  func.func @transform_2(%arg0: i32) -> (i32, i32, i32) {
    %c0_i32 = arith.constant 0 : i32
    %c0_i32_0 = arith.constant 0 : i32
    %c0_i32_1 = arith.constant 0 : i32
    return %arg0, %c0_i32, %c0_i32_0 : i32, i32, i32
  }
  func.func @transform_3(%arg0: i32) -> (i32, i32, i32) {
    %c0_i32 = arith.constant 0 : i32
    %c0_i32_0 = arith.constant 0 : i32
    %c0_i32_1 = arith.constant 0 : i32
    %c0_i32_2 = arith.constant 0 : i32
    return %c0_i32, %c0_i32_0, %c0_i32_1 : i32, i32, i32
  }
  func.func @transform_4(%arg0: i32) -> (i32, i32, i32) {
    %c0_i32 = arith.constant 0 : i32
    %c0_i32_0 = arith.constant 0 : i32
    %c0_i32_1 = arith.constant 0 : i32
    %c0_i32_2 = arith.constant 0 : i32
    return %c0_i32, %c0_i32_0, %c0_i32_1 : i32, i32, i32
  }
  func.func @transform_5(%arg0: i32) -> (i32, i32, i32) {
    %c0_i32 = arith.constant 0 : i32
    %c0_i32_0 = arith.constant 0 : i32
    %c0_i32_1 = arith.constant 0 : i32
    %c0_i32_2 = arith.constant 0 : i32
    return %c0_i32, %c0_i32_0, %c0_i32_1 : i32, i32, i32
  }
  func.func @transform_6(%arg0: i32) -> (i32, i32, i32) {
    %c0_i32 = arith.constant 0 : i32
    %c0_i32_0 = arith.constant 0 : i32
    %c0_i32_1 = arith.constant 0 : i32
    %c0_i32_2 = arith.constant 0 : i32
    return %c0_i32, %c0_i32_0, %c0_i32_1 : i32, i32, i32
  }
  func.func @transform_7(%arg0: i32) -> (i32, i32, i32) {
    %c0_i32 = arith.constant 0 : i32
    %c0_i32_0 = arith.constant 0 : i32
    %c0_i32_1 = arith.constant 0 : i32
    %c0_i32_2 = arith.constant 0 : i32
    return %c0_i32, %c0_i32_0, %c0_i32_1 : i32, i32, i32
  }
  func.func @transform_8(%arg0: i32) -> (i32, i32, i32) {
    %c0_i32 = arith.constant 0 : i32
    %c0_i32_0 = arith.constant 0 : i32
    %c0_i32_1 = arith.constant 0 : i32
    %c0_i32_2 = arith.constant 0 : i32
    return %c0_i32, %c0_i32_0, %c0_i32_1 : i32, i32, i32
  }
  func.func @transform_9(%arg0: i32) -> (i32, i32, i32) {
    %c0_i32 = arith.constant 0 : i32
    %c0_i32_0 = arith.constant 0 : i32
    %c0_i32_1 = arith.constant 0 : i32
    %c0_i32_2 = arith.constant 0 : i32
    return %c0_i32, %c0_i32_0, %c0_i32_1 : i32, i32, i32
  }
  func.func @transform_10(%arg0: i32) -> (i32, i32, i32) {
    %c0_i32 = arith.constant 0 : i32
    %c0_i32_0 = arith.constant 0 : i32
    %c0_i32_1 = arith.constant 0 : i32
    %c0_i32_2 = arith.constant 0 : i32
    return %c0_i32, %c0_i32_0, %c0_i32_1 : i32, i32, i32
  }
  func.func @transform_11(%arg0: i32) -> (i32, i32, i32) {
    %c0_i32 = arith.constant 0 : i32
    %c0_i32_0 = arith.constant 0 : i32
    %c0_i32_1 = arith.constant 0 : i32
    %c0_i32_2 = arith.constant 0 : i32
    return %c0_i32, %c0_i32_0, %c0_i32_1 : i32, i32, i32
  }
  func.func @transform_12(%arg0: i32) -> (i32, i32, i32) {
    %c0_i32 = arith.constant 0 : i32
    %c0_i32_0 = arith.constant 0 : i32
    %c0_i32_1 = arith.constant 0 : i32
    %c0_i32_2 = arith.constant 0 : i32
    return %c0_i32, %c0_i32_0, %c0_i32_1 : i32, i32, i32
  }
  func.func @transform_13(%arg0: i32) -> (i32, i32, i32) {
    %c0_i32 = arith.constant 0 : i32
    %c0_i32_0 = arith.constant 0 : i32
    %c0_i32_1 = arith.constant 0 : i32
    %c0_i32_2 = arith.constant 0 : i32
    return %c0_i32, %c0_i32_0, %c0_i32_1 : i32, i32, i32
  }
  func.func @transform_14(%arg0: i32) -> (i32, i32, i32) {
    %c0_i32 = arith.constant 0 : i32
    %c0_i32_0 = arith.constant 0 : i32
    %c0_i32_1 = arith.constant 0 : i32
    %c0_i32_2 = arith.constant 0 : i32
    return %c0_i32, %c0_i32_0, %c0_i32_1 : i32, i32, i32
  }
  func.func @transform_15(%arg0: i32) -> (i32, i32) {
    %c0_i32 = arith.constant 0 : i32
    %c0_i32_0 = arith.constant 0 : i32
    %c0_i32_1 = arith.constant 0 : i32
    return %c0_i32, %c0_i32_0 : i32, i32
  }
  func.func @transform_16(%arg0: i32) -> (i32, i32) {
    %c0_i32 = arith.constant 0 : i32
    %c0_i32_0 = arith.constant 0 : i32
    %c0_i32_1 = arith.constant 0 : i32
    return %c0_i32, %c0_i32_0 : i32, i32
  }
  func.func @transform_17(%arg0: i32) -> (i32, i32, i32) {
    %c0_i32 = arith.constant 0 : i32
    %c0_i32_0 = arith.constant 0 : i32
    %c0_i32_1 = arith.constant 0 : i32
    return %arg0, %c0_i32, %c0_i32_0 : i32, i32, i32
  }
}

</mosaic_0001>

<bundles_post_ra>
// kernel: tpu_custom_call.1
= control target key start
LH: loop header
LB: loop body
LE: loop exit
PB: predicated region body
PF: predicated region fallthrough
CT: control target
= control target key end

     0   :  { %s3357_s0 = inlined_call_operand.vmem [shape: f32[2,8,32], index: 0, kind: input, shape index: {}]   ;;  %s3358_s1 = inlined_call_operand.vmem [shape: f32[2,8,32], index: 1, kind: input, shape index: {}]   ;;  %s3359_s2 = inlined_call_operand.vmem [shape: f32[2,8,32], index: 2, kind: input, shape index: {}]   ;;  %s3360_s3 = inlined_call_operand.vmem [shape: f32[3,16,8], index: 3, kind: input, shape index: {}]   ;;  %s3361_s4 = inlined_call_operand.vmem [shape: f32[3,16,1], index: 4, kind: input, shape index: {}]   ;;  %s3362_s5 = inlined_call_operand.vmem [shape: f32[3,16,1], index: 5, kind: input, shape index: {}]   ;;  %s3363_s6 = inlined_call_operand.vmem [shape: f32[3,16,1], index: 6, kind: input, shape index: {}]   ;;  %s3364_s7 = inlined_call_operand.vmem [shape: f32[3,16,1], index: 7, kind: input, shape index: {}]   ;;  %s3365_s8 = inlined_call_operand.vmem [shape: f32[3,16,3], index: 8, kind: input, shape index: {}]   ;;  %s3366_s9 = inlined_call_operand.vmem [shape: f32[3,16,1], index: 9, kind: input, shape index: {}]   ;;  %s3367_s10 = inlined_call_operand.vmem [shape: f32[3,16,1], index: 10, kind: input, shape index: {}]   ;;  %s3368_s11 = inlined_call_operand.vmem [shape: f32[3,16,1], index: 11, kind: input, shape index: {}]   ;;  %s3369_s12 = inlined_call_operand.vmem [shape: f32[3,16,1], index: 12, kind: input, shape index: {}]   ;;  %s3370_s13 = inlined_call_operand.vmem [shape: f32[3,8,16], index: 13, kind: input, shape index: {}]   ;;  %s3371_s14 = inlined_call_operand.vmem [shape: f32[3,8,1], index: 14, kind: input, shape index: {}]   ;;  %s3372_s15 = inlined_call_operand.vmem [shape: f32[8,1], index: 15, kind: input, shape index: {}]   ;;  %s3373_s16 = inlined_call_operand.vmem [shape: f32[8,1], index: 16, kind: input, shape index: {}]   ;;  %s3374_s17 = inlined_call_operand.hbm [shape: f32[2,8,32], index: 17, kind: output, shape index: {}]  }
   0x1   :  { %3387 = sst [smem:[#allocation12_spill]] %s3357_s0 }
   0x2   :  { %3388 = sst [smem:[#allocation13_spill]] %s3358_s1 }
   0x3   :  { %3389 = sst [smem:[#allocation14_spill]] %s3359_s2 }
   0x4   :  { %3390 = sst [smem:[#allocation15_spill]] %s3360_s3 }
   0x5   :  { %3391 = sst [smem:[#allocation16_spill]] %s3361_s4 }
   0x6   :  { %22 = vsyncpa [#allocation4], 0 }
   0x7   :  { %24 = vsyncpa [#allocation4 + $0x1], 0  ;;  %s2825_s24 = smov 0   ;;  %s2827_s25 = smov 0  }
   0x8   :  { %s2829_s26 = smov 0   ;;  %s2831_s27 = smov 0  }
   0x9 LB: > { %3392 = sst [smem:[#allocation6_spill]] %s2710_s24  ;;  %s2846_s28 = sadd.s32 4294967295, %s2722_s27   ;;  %s2722_s27 = sphi %s2831_s27, %s3411_s27   ;;  %s2718_s26 = sphi %s2829_s26, %s3413_s26   ;;  %s2714_s25 = sphi %s2827_s25, %s3415_s25   ;;  %s2710_s24 = sphi %s2825_s24, %s3414_s24  }
   0xa   : > { %3393 = sst [smem:[#allocation7_spill]] %s2718_s26  ;;  %s2378_s29 = sadd.s32 4294967294, %s2722_s27  }
   0xb   : > { %3394 = sst [smem:[#allocation8_spill]] %s2722_s27  ;;  %s2850_s0 = sadd.s32 1, %s2722_s27  }
   0xc   : > { %3395 = sst [smem:[#allocation9_spill]] %s2850_s0  ;;  %s409_s30 = sadd.s32 1, %s2718_s26 }
   0xd   : > { %s406_s18 = ssub.s32 %s2722_s27, %s2850_s0  ;;  %p419_p0 = scmp.ne.s32.totalorder %s2718_s26, %s2714_s25 }
   0xe   : > { %p407_p1 = scmp.eq.s32.totalorder %s406_s18, 0  ;;  %p420_p2 = scmp.eq.s32.totalorder %s2846_s28, 1 }
   0xf   : > { %p425_p3 = scmp.ne.s32.totalorder %s2714_s25, %s2710_s24  ;;  %p426_p4 = scmp.eq.s32.totalorder %s2378_s29, 1 }
  0x10   : > { %s2861_s19 = scalar_select %p407_p1, %s2718_s26, %s409_s30  }
  0x11   : > { %p2863_p5 = por %p420_p2, %p419_p0  ;;  %p2867_p6 = por %p426_p4, %p425_p3 }
  0x12   : > { %3396 = sst [smem:[#allocation10_spill]] %s2861_s19  ;;  %p2381_p7 = scmp.ge.s32.totalorder %s2722_s27, 1 }
  0x13   : > { %s3398_s20 = scalar_select %p2867_p6, 1, 0 }
  0x14   : > { %p507_p8 = scmp.lt.s32.totalorder %s2722_s27, 3 }
  0x15   : > { %3399 = sst [smem:[#allocation11_spill]] %s3398_s20 }
  0x16   : > { %p508_p9 = pnand %p2381_p7, %p507_p8 }
  0x17   : > { %p566_p10 = scmp.lt.s32.totalorder (!%p508_p9), %s2846_s28, 1  ;;  %s3400_s3 = sld [smem:[#allocation15_spill]] (!%p508_p9) }
  0x18   : > { %511 = sbr.rel (%p508_p9) target bundleno = 3403 (0xd4b), region = 88  ;;  %s3401_s4 = sld [smem:[#allocation16_spill]] (!%p508_p9) }
  0x19   : > { %s3402_s30 = sld [smem:[#allocation12_spill]] (!%p508_p9) }
  0x1a   : > { %s3403_s0 = sld [smem:[#allocation13_spill]] (!%p508_p9) }
  0x1b   : > { %s3404_s2 = sld [smem:[#allocation14_spill]] (!%p508_p9) }
  0x1d   : > { %v581_v0 = vld [vmem:[%s3400_s3] sm:$0xff]  ;;  %vm613_vm0 = vcmask 64512   ;;  %v2724_v2 = vmov 0   ;;  %s567_s19 = scalar_select %p566_p10, %s2846_s28, 1  ;;  %v586_v5 = vld [vmem:[%s3362_s5 + $0x8] sm:$0xff]  ;;  %vm711_vm3 = vcmask 261120  }
  0x1e   : > { %v583_v1 = vld [vmem:[%s3401_s4] sm:$0xff]  ;;  %2477 = vmatprep.mubr.msk.f32.mxu0 %vm613_vm0, %v581_v0  ;;  %2622 = vset.pattern.permute.xlu0 %v2724_v2  ;;  %v584_v4 = vld [vmem:[%s3401_s4 + $0x8] sm:$0xff]  ;;  %v2725_v34 = vmov 1   ;;  %v2726_v35 = vmov 2   ;;  %v2389_v50 = vld [vmem:[%s3400_s3 + $0x10] sm:$0xff]  ;;  %vm784_vm4 = vcmask 15360  }
  0x1f   : > { %v585_v3 = vld [vmem:[%s3362_s5] sm:$0xff]  ;;  %605 = vperm.xlu0 %2622, %v583_v1   ;;  %2623 = vset.pattern.permute.xlu1 %v2724_v2  ;;  %s2890_s23 = sshll.u32 %s567_s19, 3  ;;  %v582_v7 = vld [vmem:[%s3400_s3 + $0x8] sm:$0xff]  ;;  %v2390_v53 = vld [vmem:[%s3400_s3 + $0x18] sm:$0xff]  ;;  %vm787_vm5 = vcmask 277504   ;;  %vm2731_vm14 = vmmov 0  }
  0x20   : > { %699 = vperm.xlu1 %2623, %v585_v3   ;;  %s569_s18 = scalar_lea.vmem %s3402_s30, %s2890_s23  ;;  %v588_v28 = vld [vmem:[%s3363_s6 + $0x8] sm:$0xff]  ;;  %v587_v29 = vld [vmem:[%s3363_s6] sm:$0xff]  ;;  %s573_s19 = scalar_lea.vmem %s3403_s0, %s2890_s23  ;;  %vm941_vm15 = vcmask 130048  }
  0x21   : > { %v578_v6 = vld [vmem:[%s569_s18] sm:$0xff]  ;;  %v590_v30 = vld [vmem:[%s3364_s7 + $0x8] sm:$0xff]  ;;  %s3385_s18 = smov 2  }
  0x22   : > { %2475 = vmatprep.subr.mxu0 %v578_v6  ;;  %v589_v31 = vld [vmem:[%s3364_s7] sm:$0xff]  ;;  %v2932_v32 = vld [vmem:[%s3365_s8 + $0x8] sm:$0xff] }
  0x23   : > { %610 = vperm.xlu0 %2622, %v584_v4   ;;  %2476 = vmatpush3.msra.mxu0 %v578_v6  ;;  %v591_v33 = vld [vmem:[%s3365_s8] sm:$0xff]  ;;  %v594_v51 = vld [vmem:[%s3366_s9 + $0x8] sm:$0xff] }
  0x24   : > { %704 = vperm.xlu1 %2623, %v586_v5   ;;  %2478 = vmatmul.mubr.msk.f32.vlgmr.msra.gmra.mxu0 %vm613_vm0, %v582_v7  ;;  %v579_v52 = vld [vmem:[%s573_s19] sm:$0xff]  ;;  %v596_v54 = vld [vmem:[%s3367_s10 + $0x8] sm:$0xff] }
  0x25   : > { %2489 = vmatprep.mubr.msk.f32.mxu0 %vm613_vm0, %v2389_v50  ;;  %2487 = vmatprep.subr.mxu0 %v579_v52 }
  0x26   : > { %2488 = vmatpush3.msra.mxu0 %v579_v52 }
  0x28   : > { %2490 = vmatmul.mubr.msk.f32.vlgmr.msra.gmra.mxu0 %vm613_vm0, %v2390_v53 }
  0x9a   : > { %v606_v8 = vpop.permute.xlu0 %605 }
  0x9b   : > { %v700_v9 = vpop.permute.xlu1 %699 }
  0x9e   : > { %v611_v10 = vpop.permute.xlu0 %610 }
  0x9f   : > { %v705_v13 = vpop.permute.xlu1 %704 }
  0xe4   : > { %v2479_v11 = vpop.f32.mrf.mxu0 }
  0xe5   : > { %v692_v12 = vadd.f32 %v2479_v11, %v611_v10 }
  0xe6   : > { %v686_v14 = vpop.f32.mrf.mxu0 }
  0xe7   : > { %vm696_vm1 = vcmp.gt.f32.partialorder %v692_v12, 0.0  ;;  %v708_v15 = vmul.f32 %v705_v13, %v692_v12  ;;  %v687_v16 = vadd.f32 %v686_v14, %v606_v8  ;;  %v593_v8 = vld [vmem:[%s3366_s9] sm:$0xff] }
  0xe9   : > { %vm695_vm2 = vcmp.gt.f32.partialorder %v687_v16, 0.0  ;;  %v707_v17 = vmul.f32 %v700_v9, %v687_v16  ;;  %v2903_v18 = vsel %vm696_vm1, %v692_v12, %v708_v15  ;;  %v595_v9 = vld [vmem:[%s3367_s10] sm:$0xff] }
  0xea   : > { %v725_v19 = vmul.f32 %v2903_v18, %v2903_v18  ;;  %v713_v22 = vsel %vm711_vm3, %v2903_v18, 0.0 }
  0xeb   : > { %v2907_v20 = vsel %vm695_vm2, %v687_v16, %v707_v17 }
  0xec   : > { %v712_v21 = vsel %vm711_vm3, %v2907_v20, 0.0  ;;  %v724_v23 = vmul.f32 %v2907_v20, %v2907_v20  ;;  %v727_v26 = vsel %vm711_vm3, %v725_v19, 0.0 }
  0xed   : > { %v714_v24 = vadd.f32 %v713_v22, %v712_v21 }
  0xee   : > { %v726_v25 = vsel %vm711_vm3, %v724_v23, 0.0  ;;  %v2392_v23 = vld [vmem:[%s3401_s4 + $0x18] sm:$0xff] }
  0xef   : > { %715 = vadd.xlane.f32.xlu0 %v714_v24  ;;  %v728_v27 = vadd.f32 %v727_v26, %v726_v25  ;;  %v2391_v25 = vld [vmem:[%s3401_s4 + $0x10] sm:$0xff] }
  0xf1   : > { %729 = vadd.xlane.f32.xlu1 %v728_v27 }
 0x102   : > { %759 = vperm.xlu1 %2623, %v588_v28  }
 0x105   : > { %754 = vperm.xlu0 %2622, %v587_v29  }
 0x106   : > { %771 = vperm.xlu1 %2623, %v590_v30  }
 0x109   : > { %766 = vperm.xlu0 %2622, %v589_v31  }
 0x10a   : > { %2625 = vset.pattern.permute.xlu1 %v2725_v34 }
 0x10b   : > { %809 = vperm.xlu1 %2625, %v2932_v32  }
 0x10d   : > { %2624 = vset.pattern.permute.xlu0 %v2725_v34 }
 0x10e   : > { %805 = vperm.xlu0 %2624, %v591_v33  }
 0x10f   : > { %2626 = vset.pattern.permute.xlu1 %v2726_v35 }
 0x110   : > { %825 = vperm.xlu1 %2626, %v591_v33  }
 0x112   : > { %2627 = vset.pattern.permute.xlu0 %v2726_v35 }
 0x113   : > { %829 = vperm.xlu0 %2627, %v2932_v32  }
 0x114   : > { %2629 = vset.pattern.permute.xlu1 %v2724_v2 }
 0x117   : > { %2628 = vset.pattern.permute.xlu0 %v2724_v2 }
 0x118   : > { %792 = vperm.xlu0 %2628, %v591_v33  }
 0x11c   : > { %851 = vperm.xlu0 %2628, %v594_v51  }
 0x120   : > { %865 = vperm.xlu0 %2628, %v596_v54  }
 0x178   : > { %v716_v36 = vpop.xlane.xlu0 %715 }
 0x179   : > { %v717_v37 = vrot.slane %v716_v36, 4 }
 0x17a   : > { %v730_v38 = vpop.xlane.xlu1 %729 }
 0x17b   : > { %v718_v39 = vadd.f32 %v717_v37, %v716_v36  ;;  %v731_v40 = vrot.slane %v730_v38, 4 }
 0x17d   : > { %v732_v41 = vadd.f32 %v731_v40, %v730_v38  ;;  %v719_v42 = vrot.slane %v718_v39, 2 }
 0x17e   : > { %v760_v0 = vpop.permute.xlu1 %759 }
 0x17f   : > { %v720_v43 = vadd.f32 %v719_v42, %v718_v39  ;;  %v733_v44 = vrot.slane %v732_v41, 2 }
 0x180   : > { %v755_v58 = vpop.permute.xlu0 %754 }
 0x181   : > { %v721_v45 = vrot.slane %v720_v43, 1  ;;  %v734_v46 = vadd.f32 %v733_v44, %v732_v41 }
 0x182   : > { %v772_v6 = vpop.permute.xlu1 %771 }
 0x183   : > { %v722_v47 = vadd.f32 %v721_v45, %v720_v43  ;;  %v735_v48 = vrot.slane %v734_v46, 1 }
 0x184   : > { %v767_v3 = vpop.permute.xlu0 %766 }
 0x185   : > { %2531 = vpush %v722_v47  ;;  %v736_v49 = vadd.f32 %v735_v48, %v734_v46 }
 0x186   : > { %v810_v10 = vpop.permute.xlu1 %809 }
 0x187   : > { %2533 = vpush %v736_v49 }
 0x189   : > { %v806_v14 = vpop.permute.xlu0 %805 }
 0x18b   : > { %v826_v11 = vpop.permute.xlu1 %825 }
 0x18e   : > { %v830_v22 = vpop.permute.xlu0 %829 }
 0x193   : > { %v793_v27 = vpop.permute.xlu0 %792 }
 0x197   : > { %v852_v29 = vpop.permute.xlu0 %851 }
 0x19b   : > { %v866_v31 = vpop.permute.xlu0 %865 }
 0x1b6   : > { %s2532_s27 = spop %2531 }
 0x1b7   : > { %s738_s0 = smul.f32 0.001953125, %s2532_s27 }
 0x1b8   : > { %s2534_s20 = spop %2533 }
 0x1b9   : > { %s740_s19 = smul.f32 %s738_s0, %s738_s0  ;;  %v742_v57 = vstv %s738_s0 }
 0x1ba   : > { %s739_s21 = smul.f32 0.001953125, %s2534_s20  ;;  %v743_v59 = vsub.f32 %v2907_v20, %v742_v57  ;;  %v744_v60 = vsub.f32 %v2903_v18, %v742_v57  ;;  %s3383_s20 = smov 126  }
 0x1bc   : > { %s741_s22 = ssub.f32 %s739_s21, %s740_s19  ;;  %s3381_s19 = smov 124  }
 0x1be   : > { %s745_s29 = sadd.f32 1e-08, %s741_s22 }
 0x1c0   : > { %v746_v55 = vstv %s745_s29 }
 0x1c1   : > { %2640 = vrsqrt.f32 %v746_v55 }
 0x1ce   : > { %v2641_v56 = vpop.eup %2640 }
 0x1cf   : > { %2535 = vpush %v2641_v56 }
 0x200   : > { %s2536_s30 = spop %2535 }
 0x201   : > { %v749_v61 = vstv %s2536_s30 }
 0x202   : > { %v750_v62 = vmul.f32 %v749_v61, %v743_v59  ;;  %v751_v63 = vmul.f32 %v749_v61, %v744_v60  ;;  %v2394_v59 = vld [vmem:[%s3362_s5 + $0x18] sm:$0xff]  ;;  %v2491_v61 = vpop.f32.mrf.mxu0 }
 0x204   : > { %v762_v1 = vmul.f32 %v755_v58, %v750_v62  ;;  %v763_v4 = vmul.f32 %v760_v0, %v751_v63  ;;  %v2393_v58 = vld [vmem:[%s3362_s5 + $0x10] sm:$0xff]  ;;  %v1131_v63 = vpop.f32.mrf.mxu0 }
 0x206   : > { %v774_v5 = vadd.f32 %v767_v3, %v762_v1  ;;  %v775_v7 = vadd.f32 %v772_v6, %v763_v4 }
 0x208   : > { %778 = vrot.lane.b32.xlu1 %v774_v5, %s3385_s18 }
 0x20c   : > { %780 = vrot.lane.b32.xlu1 %v775_v7, %s3385_s18 }
 0x210   : > { %797 = vperm.xlu1 %2629, %v2932_v32  }
 0x214   : > { %846 = vperm.xlu1 %2629, %v593_v8  }
 0x218   : > { %860 = vperm.xlu1 %2629, %v595_v9  }
 0x27a   : > { %v779_v12 = vpop.permute.xlu1 %778 }
 0x27b   : > { %v785_v13 = vsel %vm784_vm4, 0.0, %v779_v12 }
 0x27c   : > { %v788_v15 = vsel %vm787_vm5, %v785_v13, 0.0 }
 0x27d   : > { %v812_v16 = vmul.f32 %v806_v14, %v788_v15  ;;  %v832_v21 = vmul.f32 %v826_v11, %v788_v15  ;;  %v800_v33 = vmul.f32 %v793_v27, %v788_v15 }
 0x27e   : > { %v781_v17 = vpop.permute.xlu1 %780 }
 0x27f   : > { %v786_v18 = vsel %vm784_vm4, 0.0, %v781_v17  ;;  %816 = vrot.lane.b32.xlu1 %v812_v16, %s3383_s20 }
 0x280   : > { %v789_v19 = vsel %vm787_vm5, %v786_v18, 0.0 }
 0x281   : > { %v813_v20 = vmul.f32 %v810_v10, %v789_v19  ;;  %v833_v24 = vmul.f32 %v830_v22, %v789_v19 }
 0x283   : > { %818 = vrot.lane.b32.xlu0 %v813_v20, %s3383_s20  ;;  %836 = vrot.lane.b32.xlu1 %v832_v21, %s3381_s19 }
 0x287   : > { %1056 = vperm.xlu1 %2629, %v2392_v23   ;;  %838 = vrot.lane.b32.xlu0 %v833_v24, %s3381_s19 }
 0x28b   : > { %1051 = vperm.xlu0 %2628, %v2391_v25   ;;  %v798_v26 = vpop.permute.xlu1 %797 }
 0x28c   : > { %v801_v39 = vmul.f32 %v798_v26, %v789_v19 }
 0x28f   : > { %v847_v28 = vpop.permute.xlu1 %846 }
 0x293   : > { %v861_v30 = vpop.permute.xlu1 %860 }
 0x2f1   : > { %v817_v32 = vpop.permute.xlu1 %816 }
 0x2f2   : > { %v822_v36 = vadd.f32 %v817_v32, %v800_v33  ;;  %v2397_v32 = vld [vmem:[%s3364_s7 + $0x10] sm:$0xff] }
 0x2f3   : > { %v2395_v33 = vld [vmem:[%s3363_s6 + $0x10] sm:$0xff] }
 0x2f5   : > { %v837_v37 = vpop.permute.xlu1 %836  ;;  %v819_v38 = vpop.permute.xlu0 %818 }
 0x2f6   : > { %v842_v40 = vadd.f32 %v837_v37, %v822_v36  ;;  %v823_v42 = vadd.f32 %v819_v38, %v801_v39  ;;  %v2398_v36 = vld [vmem:[%s3364_s7 + $0x18] sm:$0xff]  ;;  %v2399_v39 = vld [vmem:[%s3365_s8 + $0x10] sm:$0xff] }
 0x2f8   : > { %v854_v41 = vadd.f32 %v847_v28, %v842_v40  ;;  %v2400_v40 = vld [vmem:[%s3365_s8 + $0x18] sm:$0xff] }
 0x2f9   : > { %v839_v43 = vpop.permute.xlu0 %838 }
 0x2fa   : > { %v868_v44 = vmul.f32 %v861_v30, %v854_v41  ;;  %v843_v45 = vadd.f32 %v839_v43, %v823_v42  ;;  %vm856_vm6 = vcmp.gt.f32.partialorder %v854_v41, 0.0 }
 0x2fc   : > { %v855_v46 = vadd.f32 %v852_v29, %v843_v45  ;;  %v2988_v47 = vsel %vm856_vm6, %v854_v41, %v868_v44 }
 0x2fd   : > { %v884_v49 = vmul.f32 %v2988_v47, %v2988_v47  ;;  %v872_v51 = vsel %vm711_vm3, %v2988_v47, 0.0 }
 0x2fe   : > { %v869_v48 = vmul.f32 %v866_v31, %v855_v46  ;;  %vm857_vm7 = vcmp.gt.f32.partialorder %v855_v46, 0.0  ;;  %v2396_v31 = vld [vmem:[%s3363_s6 + $0x18] sm:$0xff] }
 0x2ff   : > { %v886_v55 = vsel %vm711_vm3, %v884_v49, 0.0 }
 0x300   : > { %v2992_v50 = vsel %vm857_vm7, %v855_v46, %v869_v48 }
 0x301   : > { %v873_v52 = vsel %vm711_vm3, %v2992_v50, 0.0  ;;  %v885_v53 = vmul.f32 %v2992_v50, %v2992_v50 }
 0x302   : > { %v874_v54 = vadd.f32 %v873_v52, %v872_v51  ;;  %v1057_v60 = vpop.permute.xlu1 %1056 }
 0x303   : > { %v887_v56 = vsel %vm711_vm3, %v885_v53, 0.0  ;;  %v1137_v13 = vadd.f32 %v2491_v61, %v1057_v60 }
 0x304   : > { %875 = vadd.xlane.f32.xlu1 %v874_v54  ;;  %v888_v57 = vadd.f32 %v887_v56, %v886_v55 }
 0x305   : > { %vm1141_vm9 = vcmp.gt.f32.partialorder %v1137_v13, 0.0 }
 0x306   : > { %889 = vadd.xlane.f32.xlu0 %v888_v57  ;;  %v1052_v62 = vpop.permute.xlu0 %1051  ;;  %v2414_v57 = vld [vmem:[%s3400_s3 + $0x20] sm:$0xff] }
 0x307   : > { %v1132_v4 = vadd.f32 %v1131_v63, %v1052_v62  ;;  %2501 = vmatprep.mubr.msk.f32.mxu0 %vm613_vm0, %v2414_v57 }
 0x309   : > { %vm1140_vm8 = vcmp.gt.f32.partialorder %v1132_v4, 0.0 }
 0x315   : > { %1144 = vperm.xlu1 %2629, %v2393_v58  }
 0x31c   : > { %1149 = vperm.xlu0 %2628, %v2394_v59   ;;  %v2415_v59 = vld [vmem:[%s3400_s3 + $0x28] sm:$0xff] }
 0x38d   : > { %v876_v0 = vpop.xlane.xlu1 %875 }
 0x38e   : > { %v877_v1 = vrot.slane %v876_v0, 4 }
 0x38f   : > { %v890_v3 = vpop.xlane.xlu0 %889 }
 0x390   : > { %v878_v5 = vadd.f32 %v877_v1, %v876_v0  ;;  %v891_v6 = vrot.slane %v890_v3, 4 }
 0x391   : > { %v1145_v7 = vpop.permute.xlu1 %1144 }
 0x392   : > { %v879_v8 = vrot.slane %v878_v5, 2  ;;  %v892_v9 = vadd.f32 %v891_v6, %v890_v3  ;;  %v1152_v10 = vmul.f32 %v1145_v7, %v1132_v4 }
 0x394   : > { %v893_v11 = vrot.slane %v892_v9, 2  ;;  %v880_v12 = vadd.f32 %v879_v8, %v878_v5  ;;  %v3008_v16 = vsel %vm1140_vm8, %v1132_v4, %v1152_v10 }
 0x395   : > { %v1168_v21 = vmul.f32 %v3008_v16, %v3008_v16  ;;  %v1156_v24 = vsel %vm711_vm3, %v3008_v16, 0.0 }
 0x396   : > { %v881_v14 = vrot.slane %v880_v12, 1  ;;  %v894_v15 = vadd.f32 %v893_v11, %v892_v9 }
 0x397   : > { %v1150_v17 = vpop.permute.xlu0 %1149  ;;  %v1170_v28 = vsel %vm711_vm3, %v1168_v21, 0.0 }
 0x398   : > { %v1153_v18 = vmul.f32 %v1150_v17, %v1137_v13  ;;  %v882_v19 = vadd.f32 %v881_v14, %v880_v12  ;;  %v895_v20 = vrot.slane %v894_v15, 1  ;;  %v2402_v14 = vld [vmem:[%s3366_s9 + $0x18] sm:$0xff] }
 0x39a   : > { %2537 = vpush %v882_v19  ;;  %v896_v22 = vadd.f32 %v895_v20, %v894_v15  ;;  %v3012_v23 = vsel %vm1141_vm9, %v1137_v13, %v1153_v18  ;;  %v2401_v13 = vld [vmem:[%s3366_s9 + $0x10] sm:$0xff] }
 0x39b   : > { %v1157_v25 = vsel %vm711_vm3, %v3012_v23, 0.0  ;;  %v1169_v26 = vmul.f32 %v3012_v23, %v3012_v23  ;;  %v2403_v15 = vld [vmem:[%s3367_s10 + $0x10] sm:$0xff] }
 0x39c   : > { %2539 = vpush %v896_v22  ;;  %v1158_v27 = vadd.f32 %v1157_v25, %v1156_v24 }
 0x39d   : > { %v1171_v29 = vsel %vm711_vm3, %v1169_v26, 0.0 }
 0x39e   : > { %1159 = vadd.xlane.f32.xlu1 %v1158_v27  ;;  %v1172_v30 = vadd.f32 %v1171_v29, %v1170_v28 }
 0x3a0   : > { %1173 = vadd.xlane.f32.xlu0 %v1172_v30 }
 0x3af   : > { %1203 = vperm.xlu1 %2629, %v2396_v31   ;;  %v2417_v31 = vld [vmem:[%s3401_s4 + $0x28] sm:$0xff] }
 0x3b3   : > { %1210 = vperm.xlu1 %2629, %v2397_v32   ;;  %v2416_v32 = vld [vmem:[%s3401_s4 + $0x20] sm:$0xff] }
 0x3b6   : > { %1198 = vperm.xlu0 %2628, %v2395_v33  }
 0x3b7   : > { %2630 = vset.pattern.permute.xlu1 %v2725_v34 }
 0x3b8   : > { %1247 = vperm.xlu1 %2630, %v2399_v39  }
 0x3ba   : > { %1215 = vperm.xlu0 %2628, %v2398_v36  }
 0x3bc   : > { %2632 = vset.pattern.permute.xlu1 %v2726_v35 }
 0x3bd   : > { %1267 = vperm.xlu1 %2632, %v2399_v39  }
 0x3be   : > { %2631 = vset.pattern.permute.xlu0 %v2725_v34 }
 0x3bf   : > { %1251 = vperm.xlu0 %2631, %v2400_v40  }
 0x3c1   : > { %1271 = vperm.xlu1 %2632, %v2400_v40  }
 0x3c3   : > { %2633 = vset.pattern.permute.xlu0 %v2724_v2 }
 0x3c5   : > { %2634 = vset.pattern.permute.xlu1 %v2724_v2 }
 0x3cb   : > { %s2538_s21 = spop %2537 }
 0x3cc   : > { %s3036_s22 = smul.f32 0.001953125, %s2538_s21 }
 0x3cd   : > { %s2540_s29 = spop %2539 }
 0x3ce   : > { %s900_s30 = smul.f32 %s3036_s22, %s3036_s22 }
 0x3cf   : > { %s899_s19 = smul.f32 0.001953125, %s2540_s29 }
 0x3d1   : > { %s901_s24 = ssub.f32 %s899_s19, %s900_s30  ;;  %s577_s19 = scalar_lea.vmem %s3404_s2, %s2890_s23 }
 0x3d2   : > { %v3056_v58 = vld [vmem:[%s577_s19] sm:$0xff]  ;;  %s3405_s30 = smov 2  }
 0x3d3   : > { %s905_s26 = sadd.f32 1e-08, %s901_s24  ;;  %2499 = vmatprep.subr.mxu0 %v3056_v58  ;;  %s3407_s24 = smov 124  }
 0x3d4   : > { %2500 = vmatpush3.msra.mxu0 %v3056_v58 }
 0x3d5   : > { %v906_v37 = vstv %s905_s26  ;;  %2502 = vmatmul.mubr.msk.f32.vlgmr.msra.gmra.mxu0 %vm613_vm0, %v2415_v59 }
 0x3d6   : > { %2642 = vrsqrt.f32 %v906_v37 }
 0x3e3   : > { %v2643_v38 = vpop.eup %2642 }
 0x3e4   : > { %2541 = vpush %v2643_v38 }
 0x415   : > { %s3065_s26 = spop %2541 }
 0x427   : > { %v1160_v41 = vpop.xlane.xlu1 %1159 }
 0x428   : > { %v1161_v42 = vrot.slane %v1160_v41, 4 }
 0x429   : > { %v1174_v43 = vpop.xlane.xlu0 %1173 }
 0x42a   : > { %v1162_v44 = vadd.f32 %v1161_v42, %v1160_v41  ;;  %v1175_v45 = vrot.slane %v1174_v43, 4 }
 0x42b   : > { %v1204_v63 = vpop.permute.xlu1 %1203 }
 0x42c   : > { %v1163_v46 = vrot.slane %v1162_v44, 2  ;;  %v1176_v48 = vadd.f32 %v1175_v45, %v1174_v43 }
 0x42e   : > { %v1177_v49 = vrot.slane %v1176_v48, 2  ;;  %v1164_v51 = vadd.f32 %v1163_v46, %v1162_v44 }
 0x42f   : > { %v1211_v9 = vpop.permute.xlu1 %1210 }
 0x430   : > { %v1165_v52 = vrot.slane %v1164_v51, 1  ;;  %v1178_v53 = vadd.f32 %v1177_v49, %v1176_v48 }
 0x431   : > { %v1199_v0 = vpop.permute.xlu0 %1198 }
 0x432   : > { %v1166_v54 = vadd.f32 %v1165_v52, %v1164_v51  ;;  %v1179_v55 = vrot.slane %v1178_v53, 1 }
 0x433   : > { %v1248_v17 = vpop.permute.xlu1 %1247 }
 0x434   : > { %2543 = vpush %v1166_v54  ;;  %v1180_v56 = vadd.f32 %v1179_v55, %v1178_v53 }
 0x435   : > { %v1216_v10 = vpop.permute.xlu0 %1215 }
 0x436   : > { %2545 = vpush %v1180_v56 }
 0x438   : > { %v1268_v18 = vpop.permute.xlu1 %1267 }
 0x43a   : > { %v1252_v19 = vpop.permute.xlu0 %1251 }
 0x43c   : > { %v1272_v20 = vpop.permute.xlu1 %1271 }
 0x465   : > { %s2544_s23 = spop %2543 }
 0x466   : > { %s1182_s27 = smul.f32 0.001953125, %s2544_s23 }
 0x467   : > { %s2546_s0 = spop %2545 }
 0x468   : > { %s1184_s18 = smul.f32 %s1182_s27, %s1182_s27  ;;  %v1186_v62 = vstv %s1182_s27 }
 0x469   : > { %s1183_s20 = smul.f32 0.001953125, %s2546_s0  ;;  %v1187_v1 = vsub.f32 %v3008_v16, %v1186_v62  ;;  %v1188_v3 = vsub.f32 %v3012_v23, %v1186_v62  ;;  %v2404_v16 = vld [vmem:[%s3367_s10 + $0x18] sm:$0xff] }
 0x46b   : > { %s1185_s19 = ssub.f32 %s1183_s20, %s1184_s18 }
 0x46d   : > { %s1189_s21 = sadd.f32 1e-08, %s1185_s19 }
 0x46f   : > { %v1190_v60 = vstv %s1189_s21 }
 0x470   : > { %2644 = vrsqrt.f32 %v1190_v60 }
 0x47d   : > { %v2645_v61 = vpop.eup %2644 }
 0x47e   : > { %2547 = vpush %v2645_v61 }
 0x4af   : > { %s2548_s29 = spop %2547 }
 0x4b0   : > { %v1193_v4 = vstv %s2548_s29  ;;  %s3406_s29 = smov 126  }
 0x4b1   : > { %v1194_v5 = vmul.f32 %v1193_v4, %v1187_v1  ;;  %v1195_v6 = vmul.f32 %v1193_v4, %v1188_v3 }
 0x4b3   : > { %v1206_v7 = vmul.f32 %v1199_v0, %v1194_v5  ;;  %v1207_v8 = vmul.f32 %v1204_v63, %v1195_v6  ;;  %v2418_v5 = vld [vmem:[%s3362_s5 + $0x20] sm:$0xff]  ;;  %v2419_v6 = vld [vmem:[%s3362_s5 + $0x28] sm:$0xff] }
 0x4b5   : > { %v1219_v11 = vadd.f32 %v1216_v10, %v1207_v8  ;;  %v1218_v12 = vadd.f32 %v1211_v9, %v1206_v7  ;;  %v2503_v7 = vpop.f32.mrf.mxu0 }
 0x4b7   : > { %1224 = vrot.lane.b32.xlu1 %v1219_v11, %s3405_s30  ;;  %1222 = vrot.lane.b32.xlu0 %v1218_v12, %s3405_s30  ;;  %v1572_v10 = vpop.f32.mrf.mxu0 }
 0x4bb   : > { %1239 = vperm.xlu1 %2634, %v2400_v40   ;;  %1234 = vperm.xlu0 %2633, %v2399_v39  }
 0x4bf   : > { %1288 = vperm.xlu1 %2634, %v2401_v13   ;;  %1293 = vperm.xlu0 %2633, %v2402_v14  }
 0x4c3   : > { %1302 = vperm.xlu1 %2634, %v2403_v15   ;;  %1307 = vperm.xlu0 %2633, %v2404_v16  }
 0x529   : > { %v1223_v21 = vpop.permute.xlu0 %1222  ;;  %v1225_v22 = vpop.permute.xlu1 %1224 }
 0x52a   : > { %v1228_v23 = vsel %vm784_vm4, 0.0, %v1223_v21  ;;  %v1229_v24 = vsel %vm784_vm4, 0.0, %v1225_v22 }
 0x52b   : > { %v1230_v25 = vsel %vm787_vm5, %v1228_v23, 0.0  ;;  %v1231_v26 = vsel %vm787_vm5, %v1229_v24, 0.0 }
 0x52c   : > { %v1254_v27 = vmul.f32 %v1248_v17, %v1230_v25  ;;  %v1255_v28 = vmul.f32 %v1252_v19, %v1231_v26  ;;  %v1274_v29 = vmul.f32 %v1268_v18, %v1230_v25  ;;  %v1275_v30 = vmul.f32 %v1272_v20, %v1231_v26 }
 0x52e   : > { %1258 = vrot.lane.b32.xlu1 %v1254_v27, %s3406_s29  ;;  %1260 = vrot.lane.b32.xlu0 %v1255_v28, %s3406_s29 }
 0x532   : > { %1278 = vrot.lane.b32.xlu1 %v1274_v29, %s3407_s24  ;;  %1280 = vrot.lane.b32.xlu0 %v1275_v30, %s3407_s24 }
 0x536   : > { %1497 = vperm.xlu1 %2634, %v2417_v31   ;;  %1492 = vperm.xlu0 %2633, %v2416_v32   ;;  %v1235_v33 = vpop.permute.xlu0 %1234  ;;  %v1240_v36 = vpop.permute.xlu1 %1239 }
 0x537   : > { %v1242_v43 = vmul.f32 %v1235_v33, %v1230_v25  ;;  %v1243_v44 = vmul.f32 %v1240_v36, %v1231_v26 }
 0x53a   : > { %v1294_v37 = vpop.permute.xlu0 %1293  ;;  %v1289_v38 = vpop.permute.xlu1 %1288 }
 0x53e   : > { %v1308_v39 = vpop.permute.xlu0 %1307  ;;  %v1303_v40 = vpop.permute.xlu1 %1302 }
 0x5a0   : > { %v1261_v41 = vpop.permute.xlu0 %1260  ;;  %v1259_v42 = vpop.permute.xlu1 %1258 }
 0x5a1   : > { %v1265_v45 = vadd.f32 %v1261_v41, %v1243_v44  ;;  %v1264_v46 = vadd.f32 %v1259_v42, %v1242_v43  ;;  %v597_v43 = vld [vmem:[%s3368_s11] sm:$0xff]  ;;  %v600_v44 = vld [vmem:[%s3369_s12 + $0x8] sm:$0xff] }
 0x5a4   : > { %v1281_v48 = vpop.permute.xlu0 %1280  ;;  %v1279_v49 = vpop.permute.xlu1 %1278 }
 0x5a5   : > { %v1285_v51 = vadd.f32 %v1281_v48, %v1265_v45  ;;  %v1284_v52 = vadd.f32 %v1279_v49, %v1264_v46  ;;  %v598_v45 = vld [vmem:[%s3368_s11 + $0x8] sm:$0xff]  ;;  %v2406_v46 = vld [vmem:[%s3368_s11 + $0x18] sm:$0xff]  ;;  %v2730_v48 = vmov 0.0   ;;  %v599_v49 = vld [vmem:[%s3369_s12] sm:$0xff] }
 0x5a6   : > { %2480 = vmatprep.subr.mxu1 %v2730_v48  ;;  %2511 = vmatprep.subr.mxu0 %v2730_v48 }
 0x5a7   : > { %v1297_v53 = vadd.f32 %v1294_v37, %v1285_v51  ;;  %v1296_v54 = vadd.f32 %v1289_v38, %v1284_v52  ;;  %v2408_v51 = vld [vmem:[%s3369_s12 + $0x18] sm:$0xff]  ;;  %2484 = vmatprep.mubr.msk.f32.mxu1 %vm2731_vm14, %v2730_v48  ;;  %2513 = vmatprep.mubr.msk.f32.mxu0 %vm2731_vm14, %v2730_v48  ;;  %v2405_v52 = vld [vmem:[%s3368_s11 + $0x10] sm:$0xff] }
 0x5a9   : > { %v1311_v55 = vmul.f32 %v1308_v39, %v1297_v53  ;;  %v1310_v56 = vmul.f32 %v1303_v40, %v1296_v54  ;;  %vm1298_vm10 = vcmp.gt.f32.partialorder %v1296_v54, 0.0  ;;  %vm1299_vm11 = vcmp.gt.f32.partialorder %v1297_v53, 0.0 }
 0x5ab   : > { %v3097_v57 = vsel %vm1298_vm10, %v1296_v54, %v1310_v56  ;;  %v3099_v59 = vsel %vm1299_vm11, %v1297_v53, %v1311_v55  ;;  %v2420_v53 = vld [vmem:[%s3363_s6 + $0x20] sm:$0xff]  ;;  %v2407_v54 = vld [vmem:[%s3369_s12 + $0x10] sm:$0xff]  ;;  %v2421_v56 = vld [vmem:[%s3363_s6 + $0x28] sm:$0xff] }
 0x5ac   : > { %v1314_v60 = vsel %vm711_vm3, %v3097_v57, 0.0  ;;  %v1315_v61 = vsel %vm711_vm3, %v3099_v59, 0.0  ;;  %v1326_v62 = vmul.f32 %v3097_v57, %v3097_v57  ;;  %v1327_v63 = vmul.f32 %v3099_v59, %v3099_v59  ;;  %v2422_v55 = vld [vmem:[%s3364_s7 + $0x20] sm:$0xff] }
 0x5ad   : > { %v1316_v0 = vadd.f32 %v1315_v61, %v1314_v60  ;;  %v2423_v60 = vld [vmem:[%s3364_s7 + $0x28] sm:$0xff] }
 0x5ae   : > { %v1328_v1 = vsel %vm711_vm3, %v1326_v62, 0.0  ;;  %v1329_v3 = vsel %vm711_vm3, %v1327_v63, 0.0  ;;  %v3182_v63 = vld [vmem:[%s3365_s8 + $0x20] sm:$0xff] }
 0x5af   : > { %1317 = vadd.xlane.f32.xlu1 %v1316_v0  ;;  %v1330_v4 = vadd.f32 %v1329_v3, %v1328_v1  ;;  %v3187_v0 = vld [vmem:[%s3365_s8 + $0x28] sm:$0xff] }
 0x5b1   : > { %1331 = vadd.xlane.f32.xlu0 %v1330_v4  ;;  %v1498_v8 = vpop.permute.xlu1 %1497  ;;  %v1493_v9 = vpop.permute.xlu0 %1492 }
 0x5b2   : > { %v1573_v14 = vadd.f32 %v1572_v10, %v1493_v9  ;;  %v1578_v23 = vadd.f32 %v2503_v7, %v1498_v8  ;;  %v909_v10 = vstv %s3065_s26  ;;  %s563_s26 = sand.u32 1, %s2714_s25  }
 0x5b4   : > { %vm1581_vm12 = vcmp.gt.f32.partialorder %v1573_v14, 0.0  ;;  %vm1582_vm13 = vcmp.gt.f32.partialorder %v1578_v23, 0.0 }
 0x5c0   : > { %1585 = vperm.xlu1 %2634, %v2418_v5  }
 0x5c7   : > { %1590 = vperm.xlu0 %2633, %v2419_v6   ;;  %v902_v6 = vstv %s3036_s22 }
 0x638   : > { %v1318_v11 = vpop.xlane.xlu1 %1317 }
 0x639   : > { %v1319_v12 = vrot.slane %v1318_v11, 4 }
 0x63a   : > { %v1332_v13 = vpop.xlane.xlu0 %1331 }
 0x63b   : > { %v1320_v15 = vadd.f32 %v1319_v12, %v1318_v11  ;;  %v1333_v16 = vrot.slane %v1332_v13, 4 }
 0x63c   : > { %v1586_v17 = vpop.permute.xlu1 %1585 }
 0x63d   : > { %v1321_v18 = vrot.slane %v1320_v15, 2  ;;  %v1334_v19 = vadd.f32 %v1333_v16, %v1332_v13  ;;  %v1593_v20 = vmul.f32 %v1586_v17, %v1573_v14 }
 0x63f   : > { %v1335_v21 = vrot.slane %v1334_v19, 2  ;;  %v1322_v22 = vadd.f32 %v1321_v18, %v1320_v15  ;;  %v3117_v26 = vsel %vm1581_vm12, %v1573_v14, %v1593_v20 }
 0x640   : > { %v1609_v31 = vmul.f32 %v3117_v26, %v3117_v26  ;;  %v1597_v36 = vsel %vm711_vm3, %v3117_v26, 0.0 }
 0x641   : > { %v1323_v24 = vrot.slane %v1322_v22, 1  ;;  %v1336_v25 = vadd.f32 %v1335_v21, %v1334_v19 }
 0x642   : > { %v1591_v27 = vpop.permute.xlu0 %1590  ;;  %v1611_v40 = vsel %vm711_vm3, %v1609_v31, 0.0 }
 0x643   : > { %v1594_v28 = vmul.f32 %v1591_v27, %v1578_v23  ;;  %v1324_v29 = vadd.f32 %v1323_v24, %v1322_v22  ;;  %v1337_v30 = vrot.slane %v1336_v25, 1 }
 0x645   : > { %2549 = vpush %v1324_v29  ;;  %v1338_v32 = vadd.f32 %v1337_v30, %v1336_v25  ;;  %v3121_v33 = vsel %vm1582_vm13, %v1578_v23, %v1594_v28 }
 0x646   : > { %v1598_v37 = vsel %vm711_vm3, %v3121_v33, 0.0  ;;  %v1610_v38 = vmul.f32 %v3121_v33, %v3121_v33 }
 0x647   : > { %2551 = vpush %v1338_v32  ;;  %v1599_v39 = vadd.f32 %v1598_v37, %v1597_v36  ;;  %v601_v32 = vld [vmem:[%s3370_s13] sm:$0xff] }
 0x648   : > { %v1612_v41 = vsel %vm711_vm3, %v1610_v38, 0.0 }
 0x649   : > { %1600 = vadd.xlane.f32.xlu1 %v1599_v39  ;;  %v1613_v42 = vadd.f32 %v1612_v41, %v1611_v40 }
 0x64b   : > { %1614 = vadd.xlane.f32.xlu0 %v1613_v42 }
 0x65a   : > { %914 = vperm.xlu1 %2634, %v597_v43  }
 0x65e   : > { %931 = vperm.xlu1 %2634, %v600_v44  }
 0x661   : > { %919 = vperm.xlu0 %2633, %v598_v45  }
 0x662   : > { %1361 = vperm.xlu1 %2634, %v2406_v46  }
 0x665   : > { %926 = vperm.xlu0 %2633, %v599_v49  }
 0x666   : > { %1373 = vperm.xlu1 %2634, %v2408_v51  }
 0x669   : > { %1356 = vperm.xlu0 %2633, %v2405_v52  }
 0x66a   : > { %1639 = vperm.xlu1 %2634, %v2420_v53  }
 0x66d   : > { %1368 = vperm.xlu0 %2633, %v2407_v54  }
 0x66e   : > { %1651 = vperm.xlu1 %2634, %v2422_v55  }
 0x671   : > { %1644 = vperm.xlu0 %2633, %v2421_v56  }
 0x672   : > { %2635 = vset.pattern.permute.xlu1 %v2725_v34 }
 0x673   : > { %1688 = vperm.xlu1 %2635, %v3182_v63  }
 0x675   : > { %1656 = vperm.xlu0 %2633, %v2423_v60  }
 0x676   : > { %s2550_s21 = spop %2549 }
 0x677   : > { %s3174_s23 = smul.f32 0.001953125, %s2550_s21  ;;  %2637 = vset.pattern.permute.xlu1 %v2726_v35  ;;  %v904_v35 = vsub.f32 %v2992_v50, %v902_v6 }
 0x678   : > { %s2552_s27 = spop %2551  ;;  %1708 = vperm.xlu1 %2637, %v3182_v63  }
 0x679   : > { %s1342_s0 = smul.f32 %s3174_s23, %s3174_s23  ;;  %2636 = vset.pattern.permute.xlu0 %v2725_v34  ;;  %v1344_v13 = vstv %s3174_s23  ;;  %v911_v15 = vmul.f32 %v909_v10, %v904_v35  ;;  %s2382_s23 = sshll.u32 %s563_s26, 3 }
 0x67a   : > { %s1341_s18 = smul.f32 0.001953125, %s2552_s27  ;;  %1692 = vperm.xlu0 %2636, %v3187_v0   ;;  %v1346_v21 = vsub.f32 %v3099_v59, %v1344_v13  ;;  %v1345_v36 = vsub.f32 %v3097_v57, %v1344_v13  ;;  %v2409_v57 = vld [vmem:[%s3370_s13 + $0x8] sm:$0xff] }
 0x67c   : > { %s1343_s3 = ssub.f32 %s1341_s18, %s1342_s0  ;;  %1712 = vperm.xlu1 %2637, %v3187_v0  }
 0x67e   : > { %s1347_s4 = sadd.f32 1e-08, %s1343_s3  ;;  %2638 = vset.pattern.permute.xlu0 %v2724_v2 }
 0x680   : > { %v1348_v61 = vstv %s1347_s4  ;;  %2639 = vset.pattern.permute.xlu1 %v2724_v2  ;;  %v903_v2 = vsub.f32 %v2988_v47, %v902_v6 }
 0x681   : > { %2646 = vrsqrt.f32 %v1348_v61 }
 0x682   : > { %v910_v18 = vmul.f32 %v909_v10, %v903_v2 }
 0x68e   : > { %v2647_v62 = vpop.eup %2646 }
 0x68f   : > { %2553 = vpush %v2647_v62 }
 0x6c0   : > { %s3199_s27 = spop %2553 }
 0x6c1   : > { %v1351_v19 = vstv %s3199_s27 }
 0x6c2   : > { %v1353_v25 = vmul.f32 %v1351_v19, %v1346_v21  ;;  %v1352_v39 = vmul.f32 %v1351_v19, %v1345_v36  ;;  %v2410_v19 = vld [vmem:[%s3371_s14 + $0x8] sm:$0xff] }
 0x6d2   : > { %v1601_v34 = vpop.xlane.xlu1 %1600 }
 0x6d3   : > { %v1602_v1 = vrot.slane %v1601_v34, 4 }
 0x6d4   : > { %v1615_v3 = vpop.xlane.xlu0 %1614 }
 0x6d5   : > { %v1603_v4 = vadd.f32 %v1602_v1, %v1601_v34  ;;  %v1616_v5 = vrot.slane %v1615_v3, 4 }
 0x6d6   : > { %v915_v7 = vpop.permute.xlu1 %914 }
 0x6d7   : > { %v1604_v8 = vrot.slane %v1603_v4, 2  ;;  %v1617_v9 = vadd.f32 %v1616_v5, %v1615_v3  ;;  %v922_v27 = vmul.f32 %v915_v7, %v910_v18  ;;  %v2428_v3 = vld [vmem:[%s3367_s10 + $0x20] sm:$0xff] }
 0x6d9   : > { %v1618_v11 = vrot.slane %v1617_v9, 2  ;;  %v1605_v12 = vadd.f32 %v1604_v8, %v1603_v4 }
 0x6da   : > { %v932_v14 = vpop.permute.xlu1 %931 }
 0x6db   : > { %v1606_v16 = vrot.slane %v1605_v12, 1  ;;  %v1619_v17 = vadd.f32 %v1618_v11, %v1617_v9 }
 0x6dc   : > { %v920_v20 = vpop.permute.xlu0 %919 }
 0x6dd   : > { %v923_v22 = vmul.f32 %v920_v20, %v911_v15  ;;  %v1607_v23 = vadd.f32 %v1606_v16, %v1605_v12  ;;  %v1620_v50 = vrot.slane %v1619_v17, 1  ;;  %v602_v20 = vld [vmem:[%s3371_s14] sm:$0xff] }
 0x6de   : > { %v1362_v24 = vpop.permute.xlu1 %1361 }
 0x6df   : > { %2555 = vpush %v1607_v23  ;;  %v935_v28 = vadd.f32 %v932_v14, %v923_v22  ;;  %v1621_v29 = vadd.f32 %v1620_v50, %v1619_v17  ;;  %v1365_v30 = vmul.f32 %v1362_v24, %v1353_v25 }
 0x6e0   : > { %v927_v47 = vpop.permute.xlu0 %926 }
 0x6e1   : > { %v934_v31 = vadd.f32 %v927_v47, %v922_v27  ;;  %2481 = vmatpush3.msra.mxu1 %v935_v28  ;;  %2557 = vpush %v1621_v29 }
 0x6e2   : > { %2482 = vmatprep.subr.mxu1 %v2730_v48  ;;  %v1374_v59 = vpop.permute.xlu1 %1373 }
 0x6e3   : > { %v1377_v37 = vadd.f32 %v1374_v59, %v1365_v30  ;;  %2483 = vmatpush3.msra.mxu1 %v934_v31 }
 0x6e4   : > { %v1357_v38 = vpop.permute.xlu0 %1356  ;;  %2492 = vmatprep.subr.mxu1 %v2730_v48  ;;  %2485 = vmatmul.mubr.msk.f32.vlgmr.msra.gmra.mxu1 %vm941_vm15, %v601_v32 }
 0x6e5   : > { %2493 = vmatpush3.msra.mxu1 %v1377_v37  ;;  %2496 = vmatprep.mubr.msk.f32.mxu1 %vm2731_vm14, %v2730_v48  ;;  %v1364_v40 = vmul.f32 %v1357_v38, %v1352_v39 }
 0x6e6   : > { %2494 = vmatprep.subr.mxu1 %v2730_v48  ;;  %v1640_v46 = vpop.permute.xlu1 %1639 }
 0x6e8   : > { %v1369_v41 = vpop.permute.xlu0 %1368 }
 0x6e9   : > { %v1376_v42 = vadd.f32 %v1369_v41, %v1364_v40 }
 0x6ea   : > { %v1652_v61 = vpop.permute.xlu1 %1651 }
 0x6eb   : > { %2495 = vmatpush3.msra.mxu1 %v1376_v42 }
 0x6ec   : > { %2497 = vmatmul.mubr.msk.f32.vlgmr.msra.gmra.mxu1 %vm941_vm15, %v2409_v57  ;;  %2504 = vmatprep.subr.mxu1 %v2730_v48  ;;  %v1645_v49 = vpop.permute.xlu0 %1644 }
 0x6ed   : > { %2508 = vmatprep.mubr.msk.f32.mxu1 %vm2731_vm14, %v2730_v48 }
 0x6f0   : > { %v1657_v62 = vpop.permute.xlu0 %1656 }
 0x6f5   : > { %v1693_v5 = vpop.permute.xlu0 %1692 }
 0x710   : > { %s2556_s18 = spop %2555 }
 0x711   : > { %s1623_s3 = smul.f32 0.001953125, %s2556_s18  ;;  %s2733_s18 = smov 16  }
 0x712   : > { %s2558_s4 = spop %2557 }
 0x713   : > { %s1625_s20 = smul.f32 %s1623_s3, %s1623_s3  ;;  %v1627_v45 = vstv %s1623_s3 }
 0x714   : > { %s1624_s2 = smul.f32 0.001953125, %s2558_s4  ;;  %v1628_v51 = vsub.f32 %v3117_v26, %v1627_v45  ;;  %v1629_v52 = vsub.f32 %v3121_v33, %v1627_v45  ;;  %v2426_v26 = vld [vmem:[%s3366_s9 + $0x20] sm:$0xff]  ;;  %v2427_v33 = vld [vmem:[%s3366_s9 + $0x28] sm:$0xff] }
 0x716   : > { %s1626_s19 = ssub.f32 %s1624_s2, %s1625_s20 }
 0x718   : > { %s1630_s21 = sadd.f32 1e-08, %s1626_s19 }
 0x71a   : > { %v1631_v43 = vstv %s1630_s21 }
 0x71b   : > { %2648 = vrsqrt.f32 %v1631_v43 }
 0x728   : > { %v2649_v44 = vpop.eup %2648 }
 0x729   : > { %2559 = vpush %v2649_v44 }
 0x75a   : > { %s2560_s27 = spop %2559 }
 0x75b   : > { %v1634_v53 = vstv %s2560_s27 }
 0x75c   : > { %v1635_v54 = vmul.f32 %v1634_v53, %v1628_v51  ;;  %v1636_v55 = vmul.f32 %v1634_v53, %v1629_v52 }
 0x75e   : > { %v1647_v56 = vmul.f32 %v1640_v46, %v1635_v54  ;;  %v1648_v60 = vmul.f32 %v1645_v49, %v1636_v55 }
 0x760   : > { %v1660_v34 = vadd.f32 %v1657_v62, %v1648_v60  ;;  %v1659_v1 = vadd.f32 %v1652_v61, %v1647_v56  ;;  %v2431_v62 = vld [vmem:[%s3368_s11 + $0x28] sm:$0xff] }
 0x762   : > { %1665 = vrot.lane.b32.xlu1 %v1660_v34, %s3405_s30  ;;  %1663 = vrot.lane.b32.xlu0 %v1659_v1, %s3405_s30  ;;  %v2433_v34 = vld [vmem:[%s3369_s12 + $0x28] sm:$0xff]  ;;  %v2430_v1 = vld [vmem:[%s3368_s11 + $0x20] sm:$0xff] }
 0x766   : > { %1680 = vperm.xlu1 %2639, %v3187_v0   ;;  %1675 = vperm.xlu0 %2638, %v3182_v63   ;;  %v2429_v0 = vld [vmem:[%s3367_s10 + $0x28] sm:$0xff]  ;;  %v1689_v63 = vpop.permute.xlu1 %1688 }
 0x76a   : > { %1729 = vperm.xlu1 %2639, %v2426_v26   ;;  %1734 = vperm.xlu0 %2638, %v2427_v33   ;;  %v1709_v4 = vpop.permute.xlu1 %1708  ;;  %v2432_v26 = vld [vmem:[%s3369_s12 + $0x20] sm:$0xff] }
 0x76e   : > { %1743 = vperm.xlu1 %2639, %v2428_v3   ;;  %1748 = vperm.xlu0 %2638, %v2429_v0   ;;  %v1713_v6 = vpop.permute.xlu1 %1712 }
 0x7a4   : > { %v1011_v12 = vpop.f32.mrf.mxu1 }
 0x7a6   : > { %v2486_v14 = vpop.f32.mrf.mxu1 }
 0x7ac   : > { %v1452_v15 = vpop.f32.mrf.mxu1 }
 0x7ae   : > { %v2498_v18 = vpop.f32.mrf.mxu1 }
 0x7d4   : > { %v1664_v7 = vpop.permute.xlu0 %1663  ;;  %v1666_v8 = vpop.permute.xlu1 %1665 }
 0x7d5   : > { %v1669_v9 = vsel %vm784_vm4, 0.0, %v1664_v7  ;;  %v1670_v10 = vsel %vm784_vm4, 0.0, %v1666_v8  ;;  %vm2229_vm4 = vcmask 261248  }
 0x7d6   : > { %v1671_v35 = vsel %vm787_vm5, %v1669_v9, 0.0  ;;  %v1672_v11 = vsel %vm787_vm5, %v1670_v10, 0.0 }
 0x7d7   : > { %v1695_v2 = vmul.f32 %v1689_v63, %v1671_v35  ;;  %v1696_v13 = vmul.f32 %v1693_v5, %v1672_v11  ;;  %v1715_v16 = vmul.f32 %v1709_v4, %v1671_v35  ;;  %v1716_v17 = vmul.f32 %v1713_v6, %v1672_v11 }
 0x7d9   : > { %1699 = vrot.lane.b32.xlu1 %v1695_v2, %s3406_s29  ;;  %1701 = vrot.lane.b32.xlu0 %v1696_v13, %s3406_s29  ;;  %s2732_s29 = smov 112  }
 0x7dd   : > { %1719 = vrot.lane.b32.xlu1 %v1715_v16, %s3407_s24  ;;  %1721 = vrot.lane.b32.xlu0 %v1716_v17, %s3407_s24 }
 0x7e1   : > { %1380 = vperm.xlu1 %2639, %v2410_v19   ;;  %938 = vperm.xlu0 %2638, %v602_v20   ;;  %v1676_v21 = vpop.permute.xlu0 %1675  ;;  %v1681_v22 = vpop.permute.xlu1 %1680 }
 0x7e2   : > { %v1683_v29 = vmul.f32 %v1676_v21, %v1671_v35  ;;  %v1684_v47 = vmul.f32 %v1681_v22, %v1672_v11 }
 0x7e5   : > { %v1735_v23 = vpop.permute.xlu0 %1734  ;;  %v1730_v50 = vpop.permute.xlu1 %1729 }
 0x7e9   : > { %v1749_v24 = vpop.permute.xlu0 %1748  ;;  %v1744_v25 = vpop.permute.xlu1 %1743 }
 0x84b   : > { %v1702_v27 = vpop.permute.xlu0 %1701  ;;  %v1700_v28 = vpop.permute.xlu1 %1699 }
 0x84c   : > { %v1706_v30 = vadd.f32 %v1702_v27, %v1684_v47  ;;  %v1705_v31 = vadd.f32 %v1700_v28, %v1683_v29 }
 0x84f   : > { %v1722_v32 = vpop.permute.xlu0 %1721  ;;  %v1720_v59 = vpop.permute.xlu1 %1719 }
 0x850   : > { %v1726_v36 = vadd.f32 %v1722_v32, %v1706_v30  ;;  %v1725_v37 = vadd.f32 %v1720_v59, %v1705_v31  ;;  %v2434_v32 = vld [vmem:[%s3370_s13 + $0x10] sm:$0xff] }
 0x852   : > { %v1738_v38 = vadd.f32 %v1735_v23, %v1726_v36  ;;  %v1737_v39 = vadd.f32 %v1730_v50, %v1725_v37 }
 0x854   : > { %vm1740_vm1 = vcmp.gt.f32.partialorder %v1738_v38, 0.0  ;;  %v1752_v40 = vmul.f32 %v1749_v24, %v1738_v38  ;;  %vm1739_vm2 = vcmp.gt.f32.partialorder %v1737_v39, 0.0  ;;  %v1751_v41 = vmul.f32 %v1744_v25, %v1737_v39 }
 0x856   : > { %v3254_v42 = vsel %vm1740_vm1, %v1738_v38, %v1752_v40  ;;  %v3256_v57 = vsel %vm1739_vm2, %v1737_v39, %v1751_v41 }
 0x857   : > { %v1755_v43 = vsel %vm711_vm3, %v3256_v57, 0.0  ;;  %v1756_v44 = vsel %vm711_vm3, %v3254_v42, 0.0  ;;  %v1767_v45 = vmul.f32 %v3256_v57, %v3256_v57  ;;  %v1768_v46 = vmul.f32 %v3254_v42, %v3254_v42 }
 0x858   : > { %v1757_v49 = vadd.f32 %v1756_v44, %v1755_v43 }
 0x859   : > { %v1769_v51 = vsel %vm711_vm3, %v1767_v45, 0.0  ;;  %v1770_v52 = vsel %vm711_vm3, %v1768_v46, 0.0 }
 0x85a   : > { %1758 = vadd.xlane.f32.xlu1 %v1757_v49  ;;  %v1771_v53 = vadd.f32 %v1770_v52, %v1769_v51 }
 0x85c   : > { %v939_v54 = vpop.permute.xlu0 %938  ;;  %1772 = vadd.xlane.f32.xlu0 %v1771_v53  ;;  %v1381_v55 = vpop.permute.xlu1 %1380 }
 0x85d   : > { %v1012_v56 = vadd.f32 %v1011_v12, %v939_v54  ;;  %v1453_v60 = vadd.f32 %v1452_v15, %v1381_v55 }
 0x85f   : > { %v1897_v61 = vmul.f32 0.25, %v1012_v56  ;;  %2512 = vmatpush3.xpose.msk.msra.mxu0 %vm941_vm15, %v1453_v60 }
 0x860   : > { %2521 = vmatprep.subr.mxu0 %v2730_v48 }
 0x862   : > { %2514 = vmatmul.mubr.msk.f32.vlgmr.msra.gmra.mxu0 %vm941_vm15, %v1897_v61 }
 0x863   : > { %2523 = vmatprep.mubr.msk.f32.mxu0 %vm2731_vm14, %v2730_v48 }
 0x86b   : > { %2059 = vrot.lane.b32.xlu1 %v1897_v61, %s2732_s29 }
 0x86f   : > { %1802 = vperm.xlu1 %2639, %v2431_v62  }
 0x872   : > { %2061 = vrot.lane.b32.xlu0 %v1453_v60, %s2732_s29 }
 0x873   : > { %1814 = vperm.xlu1 %2639, %v2433_v34  }
 0x876   : > { %1797 = vperm.xlu0 %2638, %v2430_v1  }
 0x87a   : > { %1809 = vperm.xlu0 %2638, %v2432_v26  }
 0x8e3   : > { %v1759_v33 = vpop.xlane.xlu1 %1758 }
 0x8e4   : > { %v1760_v3 = vrot.slane %v1759_v33, 4 }
 0x8e5   : > { %v1773_v0 = vpop.xlane.xlu0 %1772 }
 0x8e6   : > { %v1761_v63 = vadd.f32 %v1760_v3, %v1759_v33  ;;  %v1774_v4 = vrot.slane %v1773_v0, 4 }
 0x8e7   : > { %v2060_v10 = vpop.permute.xlu1 %2059 }
 0x8e8   : > { %v1762_v5 = vrot.slane %v1761_v63, 2  ;;  %v1775_v6 = vadd.f32 %v1774_v4, %v1773_v0 }
 0x8e9   : > { %v2062_v7 = vpop.permute.xlu0 %2061 }
 0x8ea   : > { %v1776_v8 = vrot.slane %v1775_v6, 2  ;;  %2522 = vmatpush3.xpose.msk.msra.mxu0 %vm941_vm15, %v2062_v7  ;;  %v1763_v9 = vadd.f32 %v1762_v5, %v1761_v63 }
 0x8eb   : > { %v1803_v20 = vpop.permute.xlu1 %1802 }
 0x8ec   : > { %v1764_v35 = vrot.slane %v1763_v9, 1  ;;  %v1777_v11 = vadd.f32 %v1776_v8, %v1775_v6  ;;  %v2234_v8 = vld [vmem:[%s3373_s16] sm:$0xff] }
 0x8ed   : > { %2524 = vmatmul.mubr.msk.f32.vlgmr.msra.gmra.mxu0 %vm941_vm15, %v2060_v10 }
 0x8ee   : > { %v1765_v12 = vadd.f32 %v1764_v35, %v1763_v9  ;;  %v1778_v2 = vrot.slane %v1777_v11, 1  ;;  %v2233_v9 = vld [vmem:[%s3372_s15] sm:$0xff] }
 0x8ef   : > { %v1815_v29 = vpop.permute.xlu1 %1814 }
 0x8f0   : > { %2561 = vpush %v1765_v12  ;;  %v1779_v13 = vadd.f32 %v1778_v2, %v1777_v11 }
 0x8f1   : > { %v1798_v23 = vpop.permute.xlu0 %1797 }
 0x8f2   : > { %2563 = vpush %v1779_v13 }
 0x8f5   : > { %v1810_v30 = vpop.permute.xlu0 %1809 }
 0x921   : > { %s2562_s4 = spop %2561 }
 0x922   : > { %s1781_s30 = smul.f32 0.001953125, %s2562_s4  ;;  %v1970_v14 = vpop.f32.mrf.mxu0 }
 0x923   : > { %s2564_s20 = spop %2563  ;;  %v1974_v15 = vsel %vm613_vm0, %v1970_v14, -inf }
 0x924   : > { %s1783_s2 = smul.f32 %s1781_s30, %s1781_s30  ;;  %1975 = vmax.xlane.f32.xlu1 %v1974_v15  ;;  %v2515_v16 = vpop.f32.mrf.mxu0  ;;  %v1785_v19 = vstv %s1781_s30 }
 0x925   : > { %s1782_s19 = smul.f32 0.001953125, %s2564_s20  ;;  %v1786_v21 = vsub.f32 %v3256_v57, %v1785_v19  ;;  %v1787_v22 = vsub.f32 %v3254_v42, %v1785_v19  ;;  %v2435_v57 = vld [vmem:[%s3371_s14 + $0x10] sm:$0xff] }
 0x927   : > { %s1784_s21 = ssub.f32 %s1782_s19, %s1783_s2 }
 0x929   : > { %s1788_s24 = sadd.f32 1e-08, %s1784_s21 }
 0x92b   : > { %v1789_v17 = vstv %s1788_s24 }
 0x92c   : > { %2650 = vrsqrt.f32 %v1789_v17 }
 0x939   : > { %v2651_v18 = vpop.eup %2650 }
 0x93a   : > { %2565 = vpush %v2651_v18 }
 0x96b   : > { %s2566_s27 = spop %2565 }
 0x96c   : > { %v1792_v50 = vstv %s2566_s27 }
 0x96d   : > { %v1793_v24 = vmul.f32 %v1792_v50, %v1786_v21  ;;  %v1794_v25 = vmul.f32 %v1792_v50, %v1787_v22 }
 0x96f   : > { %v1805_v27 = vmul.f32 %v1798_v23, %v1793_v24  ;;  %v1806_v28 = vmul.f32 %v1803_v20, %v1794_v25 }
 0x971   : > { %v1818_v47 = vadd.f32 %v1815_v29, %v1806_v28  ;;  %v1817_v31 = vadd.f32 %v1810_v30, %v1805_v27 }
 0x973   : > { %2505 = vmatpush3.msra.mxu1 %v1818_v47 }
 0x974   : > { %2506 = vmatprep.subr.mxu1 %v2730_v48 }
 0x975   : > { %2507 = vmatpush3.msra.mxu1 %v1817_v31 }
 0x976   : > { %2509 = vmatmul.mubr.msk.f32.vlgmr.msra.gmra.mxu1 %vm941_vm15, %v2434_v32  ;;  %2516 = vmatprep.subr.mxu1 %v2730_v48 }
 0x977   : > { %2518 = vmatprep.mubr.msk.f32.mxu1 %vm2731_vm14, %v2730_v48 }
 0x9ad   : > { %v2133_v59 = vpop.f32.mrf.mxu0  ;;  %v1976_v36 = vpop.xlane.xlu1 %1975 }
 0x9ae   : > { %v1977_v37 = vsub.f32 %v1970_v14, %v1976_v36  ;;  %v2137_v38 = vsel %vm613_vm0, %v2133_v59, -inf }
 0x9af   : > { %2138 = vmax.xlane.f32.xlu0 %v2137_v38  ;;  %v2525_v39 = vpop.f32.mrf.mxu0 }
 0x9b0   : > { %v1978_v40 = vmul.f32 1.442695, %v1977_v37 }
 0x9b2   : > { %2652 = vpow2.f32 %v1978_v40 }
 0x9bf   : > { %v2653_v41 = vpop.eup %2652 }
 0x9c0   : > { %v1980_v42 = vsel %vm613_vm0, %v2653_v41, 0.0 }
 0x9c1   : > { %1981 = vadd.xlane.f32.xlu1 %v1980_v42 }
 0x9c5   : > { %1821 = vperm.xlu0 %2638, %v2435_v57  }
 0xa36   : > { %v1893_v43 = vpop.f32.mrf.mxu1 }
 0xa38   : > { %v2139_v44 = vpop.xlane.xlu0 %2138  ;;  %v2510_v45 = vpop.f32.mrf.mxu1 }
 0xa39   : > { %v2140_v46 = vsub.f32 %v2133_v59, %v2139_v44 }
 0xa3b   : > { %v2141_v49 = vmul.f32 1.442695, %v2140_v46 }
 0xa3d   : > { %2654 = vpow2.f32 %v2141_v49 }
 0xa40   : > { %v1822_v51 = vpop.permute.xlu0 %1821 }
 0xa41   : > { %v1894_v52 = vadd.f32 %v1893_v43, %v1822_v51 }
 0xa43   : > { %2517 = vmatpush3.msra.mxu1 %v1894_v52 }
 0xa44   : > { %2526 = vmatprep.subr.mxu1 %v2730_v48 }
 0xa4a   : > { %v2655_v53 = vpop.eup %2654  ;;  %v1982_v54 = vpop.xlane.xlu1 %1981 }
 0xa4b   : > { %2656 = vrcp.f32 %v1982_v54  ;;  %v2143_v55 = vsel %vm613_vm0, %v2655_v53, 0.0 }
 0xa4c   : > { %2144 = vadd.xlane.f32.xlu1 %v2143_v55 }
 0xa58   : > { %v2657_v56 = vpop.eup %2656 }
 0xa59   : > { %v1984_v60 = vmul.f32 %v2657_v56, %v2653_v41 }
 0xa5b   : > { %2519 = vmatmul.mubr.msk.f32.vlgmr.msra.gmra.mxu1 %vm613_vm0, %v1984_v60 }
 0xa5c   : > { %2528 = vmatprep.mubr.msk.f32.mxu1 %vm2731_vm14, %v2730_v48 }
 0xa5d   : > { %2149 = vrot.lane.b32.xlu1 %v1894_v52, %s2732_s29  ;;  %s565_s29 = scalar_lea.vmem [#allocation3], %s2382_s23 }
 0xa5e   : > { %s2295_s3 = sshll.u32 %s565_s29, 4  ;;  %s2296_s3 = int_to_ptr.vmem [resolvable:$true] %s2295_s3 }
 0xad5   : > { %v2145_v61 = vpop.xlane.xlu1 %2144 }
 0xad6   : > { %2658 = vrcp.f32 %v2145_v61 }
 0xad9   : > { %v2150_v62 = vpop.permute.xlu1 %2149 }
 0xada   : > { %2527 = vmatpush3.msra.mxu1 %v2150_v62 }
 0xae3   : > { %v2659_v34 = vpop.eup %2658 }
 0xae4   : > { %v2147_v1 = vmul.f32 %v2659_v34, %v2655_v53 }
 0xae6   : > { %2529 = vmatmul.mubr.msk.f32.vlgmr.msra.gmra.mxu1 %vm613_vm0, %v2147_v1 }
 0xb1b   : > { %v2054_v26 = vpop.f32.mrf.mxu1 }
 0xb1c   : > { %2058 = vst.msk [vmem:[#allocation2] sm:$0xff] %vm941_vm15, %v2054_v26 }
 0xb1d   : > { %v2520_v33 = vpop.f32.mrf.mxu1 }
 0xba6   : > { %v2221_v3 = vpop.f32.mrf.mxu1 }
 0xba7   : > { %2226 = vrot.lane.b32.xlu0 %v2221_v3, %s2733_s18  ;;  %s2446_s18 = sshll.u32 %s2846_s28, 7 }
 0xba8   : > { %v2530_v0 = vpop.f32.mrf.mxu1 }
 0xc19   : > { %v2227_v48 = vpop.permute.xlu0 %2226 }
 0xc1a   : > { %2230 = vst.msk [vmem:[#allocation2] sm:$0xff] %vm2229_vm4, %v2227_v48 }
 0xc21   : > { %v2231_v63 = vld [vmem:[#allocation2] sm:$0xff] }
 0xc22   : > { %v2232_v4 = vadd.f32 %v2231_v63, %v3056_v58 }
 0xc24   : > { %v2235_v5 = vsel %vm711_vm3, %v2232_v4, 0.0  ;;  %v2245_v6 = vmul.f32 %v2232_v4, %v2232_v4 }
 0xc25   : > { %2236 = vadd.xlane.f32.xlu0 %v2235_v5 }
 0xc26   : > { %v2246_v7 = vsel %vm711_vm3, %v2245_v6, 0.0 }
 0xc27   : > { %2247 = vadd.xlane.f32.xlu1 %v2246_v7 }
 0xc38   : > { %2276 = vperm.xlu1 %2639, %v2234_v8  }
 0xc3b   : > { %2270 = vperm.xlu0 %2638, %v2233_v9  }
 0xcae   : > { %v2237_v10 = vpop.xlane.xlu0 %2236 }
 0xcaf   : > { %v2238_v35 = vrot.slane %v2237_v10, 4 }
 0xcb0   : > { %v2248_v58 = vpop.xlane.xlu1 %2247 }
 0xcb1   : > { %v2239_v11 = vadd.f32 %v2238_v35, %v2237_v10  ;;  %v2249_v12 = vrot.slane %v2248_v58, 4 }
 0xcb3   : > { %v2240_v2 = vrot.slane %v2239_v11, 2  ;;  %v2250_v13 = vadd.f32 %v2249_v12, %v2248_v58 }
 0xcb4   : > { %v2277_v29 = vpop.permute.xlu1 %2276 }
 0xcb5   : > { %v2251_v14 = vrot.slane %v2250_v13, 2  ;;  %v2241_v15 = vadd.f32 %v2240_v2, %v2239_v11 }
 0xcb6   : > { %v2271_v27 = vpop.permute.xlu0 %2270 }
 0xcb7   : > { %v2242_v16 = vrot.slane %v2241_v15, 1  ;;  %v2252_v17 = vadd.f32 %v2251_v14, %v2250_v13 }
 0xcb9   : > { %v2243_v18 = vadd.f32 %v2242_v16, %v2241_v15  ;;  %v2253_v19 = vrot.slane %v2252_v17, 1 }
 0xcbb   : > { %2567 = vpush %v2243_v18  ;;  %v2254_v20 = vadd.f32 %v2253_v19, %v2252_v17 }
 0xcbd   : > { %2569 = vpush %v2254_v20 }
 0xcec   : > { %s2568_s20 = spop %2567 }
 0xced   : > { %s2256_s2 = smul.f32 0.00390625, %s2568_s20  ;;  %s2293_s20 = scalar_lea.hbm %s3374_s17, %s2446_s18 }
 0xcee   : > { %s2570_s19 = spop %2569 }
 0xcef   : > { %s2258_s21 = smul.f32 %s2256_s2, %s2256_s2  ;;  %v2260_v23 = vstv %s2256_s2  ;;  %s2282_s2 = scalar_lea.sflag [#allocation4], %s563_s26 }
 0xcf0   : > { %s2257_s24 = smul.f32 0.00390625, %s2570_s19  ;;  %v2261_v50 = vsub.f32 %v2232_v4, %v2260_v23  ;;  %s2662_s19 = scalar_lea.vmem %s2296_s3, 128 }
 0xcf1   : > { %p2663_p11 = scmp.ne.s32.totalorder %s2296_s3, %s2662_s19 }
 0xcf2   : > { %s2259_s27 = ssub.f32 %s2257_s24, %s2258_s21  ;;  %s2734_s21 = smov [#allocation3]  }
 0xcf3   : > { %p2664_p12 = pnand %p2663_p11, %p2863_p5  ;;  %s2666_s28 = sshll.u32 %s2734_s21, 4  ;;  %s2667_s28 = int_to_ptr.vmem [resolvable:$false] %s2666_s28 }
 0xcf4   : > { %s2262_s22 = sadd.f32 1e-08, %s2259_s27  ;;  %s2668_s24 = scalar_lea.vmem %s2667_s28, 256 }
 0xcf5   : > { %p2665_p13 = pneg %p2664_p12  ;;  %p2669_p0 = scmp.lt.s32.totalorder %s2296_s3, %s2667_s28 }
 0xcf6   : > { %v2263_v21 = vstv %s2262_s22  ;;  %p2670_p1 = scmp.lt.s32.totalorder %s2668_s24, %s2662_s19 }
 0xcf7   : > { %2660 = vrsqrt.f32 %v2263_v21 }
 0xcf8   : > { %p2671_p2 = por %p2670_p1, %p2669_p0 }
 0xcfa   : > { %p2672_p3 = pnand %p2671_p2, %p2665_p13 }
 0xd04   : > { %v2661_v22 = vpop.eup %2660 }
 0xd05   : > { %2571 = vpush %v2661_v22 }
 0xd36   : > { %s2572_s0 = spop %2571 }
 0xd37   : > { %v2266_v24 = vstv %s2572_s0 }
 0xd38   : > { %v2267_v25 = vmul.f32 %v2266_v24, %v2261_v50 }
 0xd3a   : > { %v2273_v28 = vmul.f32 %v2271_v27, %v2267_v25 }
 0xd3c   : > { %v2279_v47 = vadd.f32 %v2277_v29, %v2273_v28 }
 0xd3e   : > { %2280 = vst.msk [vmem:[%s565_s29] sm:$0xff] %vm711_vm3, %v2279_v47 }
 0xd3f   : > { %2675 = shalt.err (!%p2672_p3)
}
 0xd40   : > { %s2676_s27 = scalar_lea.hbm %s2293_s20, 128  ;;  %s2680_s23 = scalar_lea.hbm %s3374_s17, 256 }
 0xd41   : > { %p2677_p4 = scmp.ne.s32.totalorder %s2293_s20, %s2676_s27  ;;  %p2681_p9 = scmp.lt.s32.totalorder %s2293_s20, %s3374_s17 }
 0xd42   : > { %p2682_p10 = scmp.lt.s32.totalorder %s2680_s23, %s2676_s27 }
 0xd43   : > { %p2678_p7 = pnand %p2677_p4, %p2863_p5 }
 0xd44   : > { %p2683_p11 = por %p2682_p10, %p2681_p9 }
 0xd45   : > { %p2679_p8 = pneg %p2678_p7 }
 0xd47   : > { %p2684_p12 = pnand %p2683_p11, %p2679_p8 }
 0xd49   : > { %2687 = shalt.err (!%p2684_p12)
}
 0xd4a   : > { %2573 = dma.vmem_to_hbm [thread:$0]  (%p2863_p5), %s2296_s3, 128, %s2293_s20, %s2282_s2  }
 0xd4b PF: > { %s3408_s29 = sld [smem:[#allocation8_spill]] }
 0xd4c   : > { %s3409_s4 = sld [smem:[#allocation6_spill]] }
 0xd51   : > { %p2579_p13 = scmp.ge.s32.totalorder %s3408_s29, 2 }
 0xd52   : > { %s2307_s19 = sand.u32 1, %s3409_s4  }
 0xd53   : > { %p2576_p0 = pnand %p2579_p13, %p2867_p6  ;;  %s2308_s21 = scalar_lea.sflag [#allocation4], %s2307_s19 }
 0xd55   : > { %p2577_p1 = pneg %p2576_p0 }
 0xd57   : > { %2705 = dma.done.wait (%p2577_p1), %s2308_s21, 128  }
 0xd58   : > { %2707 = vsyncadd (%p2577_p1), %s2308_s21, 4294967168  ;;  %s3411_s27 = sld [smem:[#allocation9_spill]]  ;;  %s3414_s24 = smov %s2714_s25 }
 0xd59   : > { %s3412_s28 = sld [smem:[#allocation7_spill]] }
 0xd5a   : > { %s3413_s26 = sld [smem:[#allocation10_spill]] }
 0xd5e   : > { %p27_p2 = scmp.ge.s32.totalorder %s3411_s27, 4  }
 0xd5f   : > { %s3415_s25 = smov %s3412_s28 }
 0xd60   :  { %29 = sbr.rel (!%p27_p2) target bundleno = 9 (0x9), region = 153 }
 0xd65   :  { %2313 = vsyncpa [#allocation4], 1 }
 0xd66   :  { %2315 = vsyncpa [#allocation4 + $0x1], 1 }

</bundles_post_ra>
